<compile_context>
chip_gen: v7x
topology: tpu7x:2x2x1
jax: 0.10.0
libtpu: 0.0.40
codegen_flags: <defaults>
</compile_context>

<pallas_src>
import functools

import numpy as np
import jax
import jax.numpy as jnp
from jax import lax
from jax.experimental import pallas as pl
from jax.experimental.pallas import tpu as pltpu

NEG_SLOPE = 0.2


def _leaky_relu(v, slope=NEG_SLOPE):
    return jnp.where(v >= 0, v, slope * v)


def _stack_taps(a_ext, E, Wp, NBP):
    """Stack the 9 shifted 3x3-tap views of a zero-extended flat padded slab.

    a_ext: (C, NBP + 2E) f32, E = Wp + 1 extra zero lanes on each side.
    Returns (9*C, NBP) with rows [t*C:(t+1)*C] holding the view for tap
    t = ky*3 + kx, i.e. stacked[t*C + i, q] = a_ext[i, E + q + (ky-1)*Wp + (kx-1)].
    """
    pieces = []
    for ky in range(3):
        for kx in range(3):
            start = E + (ky - 1) * Wp + (kx - 1)      # static, in [0, 2E]
            pieces.append(a_ext[:, start:start + NBP])
    return jnp.concatenate(pieces, axis=0)


def _res_block_kernel(has_sc_conv, Wp, NBP, E,
                      x_ref, mask_ref, w1_ref, b1_ref, w2_ref, b2_ref, *rest):
    if has_sc_conv:
        ws_ref, bs_ref, scale_ref, o_ref = rest
    else:
        scale_ref, o_ref = rest

    c_out = w1_ref.shape[0]
    x_ext = x_ref[0].astype(jnp.float32)          # (C_in, NBP + 2E), zero edges
    mask = mask_ref[...]                          # (1, NBP): 1.0 on real pixels

    # Stack the 9 conv-tap views once; leaky_relu commutes with the gather, so
    # the same stack serves conv1 (lrelu'd) and the shortcut conv (raw).
    if has_sc_conv:
        sx = _stack_taps(x_ext, E, Wp, NBP)       # (9*C_in, NBP)
        a1 = _leaky_relu(sx)
    else:
        a1 = _stack_taps(_leaky_relu(x_ext), E, Wp, NBP)

    # --- conv1(leaky_relu(x)) : ONE MXU matmul, K = 9*C_in --------------------
    h1 = jnp.dot(w1_ref[...], a1, preferred_element_type=jnp.float32,
                 precision=lax.Precision.HIGHEST) + b1_ref[...]
    # second leaky_relu, then zero every halo lane so h1 is a correctly
    # zero-padded input slab for conv2.
    h1 = _leaky_relu(h1) * mask

    zpad = jnp.zeros((c_out, E), jnp.float32)
    h1_ext = jnp.concatenate([zpad, h1, zpad], axis=1)   # (C_out, NBP + 2E)
    sh1 = _stack_taps(h1_ext, E, Wp, NBP)                # (9*C_out, NBP)

    # --- conv2(...) * conv2_scale : ONE MXU matmul, K = 9*C_out ---------------
    h2 = jnp.dot(w2_ref[...], sh1, preferred_element_type=jnp.float32,
                 precision=lax.Precision.HIGHEST) + b2_ref[...]
    h2 = h2 * scale_ref[...]                      # (1,1) broadcast

    # --- shortcut --------------------------------------------------------------
    if has_sc_conv:
        sc = jnp.dot(ws_ref[...], sx, preferred_element_type=jnp.float32,
                     precision=lax.Precision.HIGHEST) + bs_ref[...]
    else:
        sc = x_ext[:, E:E + NBP]                  # identity (C_in == C_out)

    # Halo lanes carry don't-care values; the wrapper crops them.
    o_ref[0] = (h2 + sc).astype(o_ref.dtype)


def _pick_group_size(N, P, c_in, c_out, max_lanes=8192, vmem_budget=12 << 20):
    """Largest divisor of N whose lane-concatenated slab stays comfortably in VMEM."""
    best = 1
    for nb in range(1, N + 1):
        if N % nb:
            continue
        lanes = nb * P
        live_f32 = lanes * (11 * c_in + 14 * c_out) * 4   # coarse live-slab bound
        if lanes <= max_lanes and live_f32 <= vmem_budget:
            best = nb
    return best


def res_block_forward(x, w1, b1, w2, b2, scale, ws=None, bs=None):
    """Forward pass of res_block (PyTorch semantics). x is NCHW."""
    N, C_in, H, W = x.shape
    C_out = w1.shape[0]
    has_sc_conv = ws is not None
    if not has_sc_conv and C_in != C_out:
        raise ValueError("identity shortcut requires n_in == n_out")

    Hp, Wp = H + 2, W + 2
    P = Hp * Wp
    E = Wp + 1                                    # max |tap offset| on the flat axis
    NB = _pick_group_size(N, P, C_in, C_out)
    G = N // NB
    NBP = NB * P

    # NCHW -> per-image zero halo -> flatten spatial -> concatenate NB images on
    # the lane axis -> add E extra zero lanes per side (tap-slice headroom).
    xf = jnp.pad(x, ((0, 0), (0, 0), (1, 1), (1, 1))).reshape(N, C_in, P)
    xg = xf.reshape(G, NB, C_in, P).transpose(0, 2, 1, 3).reshape(G, C_in, NBP)
    x_ext = jnp.pad(xg, ((0, 0), (0, 0), (E, E)))

    # torch OIHW (C_out, C_in, 3, 3) -> (C_out, 9*C_in), column block t = ky*3+kx.
    def prep_w(w):
        co, ci = w.shape[0], w.shape[1]
        return jnp.transpose(w, (0, 2, 3, 1)).reshape(co, 9 * ci).astype(jnp.float32)

    w1k, w2k = prep_w(w1), prep_w(w2)
    b1k = b1.reshape(C_out, 1).astype(jnp.float32)
    b2k = b2.reshape(C_out, 1).astype(jnp.float32)
    scale_k = jnp.asarray(scale, jnp.float32).reshape(1, 1)

    # Static interior mask: 1.0 exactly on real output pixels (row in [1,H],
    # col in [1,W] of the padded image), 0 on every halo lane.
    p = np.arange(P)
    valid = ((p // Wp >= 1) & (p // Wp <= H) & (p % Wp >= 1) & (p % Wp <= W))
    mask = jnp.asarray(np.tile(valid.astype(np.float32), NB).reshape(1, NBP))

    inputs = [x_ext, mask, w1k, b1k, w2k, b2k]
    in_specs = [
        pl.BlockSpec((1, C_in, NBP + 2 * E), lambda g: (g, 0, 0)),
        pl.BlockSpec((1, NBP), lambda g: (0, 0)),
        pl.BlockSpec((C_out, 9 * C_in), lambda g: (0, 0)),
        pl.BlockSpec((C_out, 1), lambda g: (0, 0)),
        pl.BlockSpec((C_out, 9 * C_out), lambda g: (0, 0)),
        pl.BlockSpec((C_out, 1), lambda g: (0, 0)),
    ]
    if has_sc_conv:
        inputs += [prep_w(ws), bs.reshape(C_out, 1).astype(jnp.float32)]
        in_specs += [
            pl.BlockSpec((C_out, 9 * C_in), lambda g: (0, 0)),
            pl.BlockSpec((C_out, 1), lambda g: (0, 0)),
        ]
    inputs.append(scale_k)
    in_specs.append(pl.BlockSpec((1, 1), lambda g: (0, 0)))

    kernel = functools.partial(_res_block_kernel, has_sc_conv, Wp, NBP, E)

    out = pl.pallas_call(
        kernel,
        out_shape=jax.ShapeDtypeStruct((G, C_out, NBP), x.dtype),
        grid_spec=pltpu.PrefetchScalarGridSpec(
            num_scalar_prefetch=0,
            grid=(G,),
            in_specs=in_specs,
            out_specs=pl.BlockSpec((1, C_out, NBP), lambda g: (g, 0, 0)),
        ),
        compiler_params=pltpu.CompilerParams(
            dimension_semantics=("parallel",),
        ),
    )(*inputs)

    # (G, C_out, NB*P) -> (N, C_out, Hp, Wp) -> drop the halo -> NCHW interior.
    out = out.reshape(G, C_out, NB, Hp, Wp).transpose(0, 2, 1, 3, 4)
    return out.reshape(N, C_out, Hp, Wp)[:, :, 1:H + 1, 1:W + 1]


# ----------------------------- self-test -------------------------------------
def _ref_forward(x, w1, b1, w2, b2, scale, ws=None, bs=None):
    def conv(h, w, b):
        y = lax.conv_general_dilated(
            h, w, window_strides=(1, 1), padding=((1, 1), (1, 1)),
            dimension_numbers=("NCHW", "OIHW", "NCHW"),
            precision=lax.Precision.HIGHEST)
        return y + b.reshape(1, -1, 1, 1)

    lrelu = lambda t: jnp.where(t >= 0, t, 0.2 * t)
    h = conv(lrelu(x), w1, b1)
    h = conv(lrelu(h), w2, b2) * scale.reshape(())[None]
    sc = conv(x, ws, bs) if ws is not None else x
    return h + sc


if __name__ == "__main__":
    key = jax.random.PRNGKey(0)
    N, C_in, H, W = 2, 4, 16, 16
    x = jax.random.normal(key, (N, C_in, H, W), jnp.float32)

    def make_params(k, c_in, c_out, shortcut_conv):
        ks = jax.random.split(k, 6)
        w1 = 0.3 * jax.random.normal(ks[0], (c_out, c_in, 3, 3), jnp.float32)
        b1 = 0.1 * jax.random.normal(ks[1], (c_out,), jnp.float32)
        w2 = 0.3 * jax.random.normal(ks[2], (c_out, c_out, 3, 3), jnp.float32)
        b2 = 0.1 * jax.random.normal(ks[3], (c_out,), jnp.float32)
        scale = jnp.asarray([1.3], jnp.float32)
        if shortcut_conv:
            ws = 0.3 * jax.random.normal(ks[4], (c_out, c_in, 3, 3), jnp.float32)
            bs = 0.1 * jax.random.normal(ks[5], (c_out,), jnp.float32)
        else:
            ws, bs = None, None
        return w1, b1, w2, b2, scale, ws, bs

    # Case 1: n_in == n_out (identity shortcut). Case 2: n_in != n_out (conv).
    for c_out in (C_in, 2 * C_in):
        params = make_params(jax.random.fold_in(key, c_out), C_in, c_out,
                             c_out != C_in)
        y = jax.block_until_ready(res_block_forward(x, *params))
        y_ref = _ref_forward(x, *params)
        assert y.shape == (N, c_out, H, W) and y.dtype == x.dtype
        err = float(jnp.max(jnp.abs(y - y_ref)))
        assert err < 5e-4, f"max abs err {err} (c_out={c_out})"

    print("KERNEL_OK")
</pallas_src>

<mosaic_0001>
module attributes {stable_mosaic.version = 11 : i64} {
  func.func @_res_block_kernel(%arg0: i32, %arg1: memref<1x4x686xf32, #tpu.memory_space<vmem>>, %arg2: memref<1x648xf32, #tpu.memory_space<vmem>>, %arg3: memref<4x36xf32, #tpu.memory_space<vmem>>, %arg4: memref<4x1xf32, #tpu.memory_space<vmem>>, %arg5: memref<4x36xf32, #tpu.memory_space<vmem>>, %arg6: memref<4x1xf32, #tpu.memory_space<vmem>>, %arg7: memref<1x1xf32, #tpu.memory_space<vmem>>, %arg8: memref<1x4x648xf32, #tpu.memory_space<vmem>>) attributes {dimension_semantics = [#tpu.dimension_semantics<parallel>], iteration_bounds = array<i64: 1>, scalar_prefetch = 0 : i64, scratch_operands = 0 : i64, tpu.core_type = #tpu.core_type<tc>, window_params = [{transform_indices = @transform_0, window_bounds = array<i64: 1, 4, 686>}, {pipeline_mode = #tpu.pipeline_mode<synchronous>, transform_indices = @transform_1, window_bounds = array<i64: 1, 648>}, {pipeline_mode = #tpu.pipeline_mode<synchronous>, transform_indices = @transform_2, window_bounds = array<i64: 4, 36>}, {pipeline_mode = #tpu.pipeline_mode<synchronous>, transform_indices = @transform_3, window_bounds = array<i64: 4, 1>}, {pipeline_mode = #tpu.pipeline_mode<synchronous>, transform_indices = @transform_4, window_bounds = array<i64: 4, 36>}, {pipeline_mode = #tpu.pipeline_mode<synchronous>, transform_indices = @transform_5, window_bounds = array<i64: 4, 1>}, {pipeline_mode = #tpu.pipeline_mode<synchronous>, transform_indices = @transform_6, window_bounds = array<i64: 1, 1>}, {transform_indices = @transform_7, window_bounds = array<i64: 1, 4, 648>}]} {
    %c0 = arith.constant 0 : index
    %c0_0 = arith.constant 0 : index
    %c0_1 = arith.constant 0 : index
    %0 = vector.load %arg1[%c0, %c0_0, %c0_1] : memref<1x4x686xf32, #tpu.memory_space<vmem>>, vector<1x4x686xf32>
    %1 = vector.shape_cast %0 : vector<1x4x686xf32> to vector<4x686xf32>
    %c0_2 = arith.constant 0 : index
    %c0_3 = arith.constant 0 : index
    %2 = vector.load %arg2[%c0_2, %c0_3] : memref<1x648xf32, #tpu.memory_space<vmem>>, vector<1x648xf32>
    %cst = arith.constant 0.000000e+00 : f32
    %3 = vector.broadcast %cst : f32 to vector<4x686xf32>
    %4 = arith.cmpf oge, %1, %3 : vector<4x686xf32>
    %cst_4 = arith.constant 2.000000e-01 : f32
    %5 = vector.broadcast %cst_4 : f32 to vector<4x686xf32>
    %6 = arith.mulf %5, %1 : vector<4x686xf32>
    %7 = arith.select %4, %1, %6 : vector<4x686xi1>, vector<4x686xf32>
    %8 = vector.extract_strided_slice %7 {offsets = [0, 0], sizes = [4, 648], strides = [1, 1]} : vector<4x686xf32> to vector<4x648xf32>
    %9 = vector.extract_strided_slice %7 {offsets = [0, 1], sizes = [4, 648], strides = [1, 1]} : vector<4x686xf32> to vector<4x648xf32>
    %10 = vector.extract_strided_slice %7 {offsets = [0, 2], sizes = [4, 648], strides = [1, 1]} : vector<4x686xf32> to vector<4x648xf32>
    %11 = vector.extract_strided_slice %7 {offsets = [0, 18], sizes = [4, 648], strides = [1, 1]} : vector<4x686xf32> to vector<4x648xf32>
    %12 = vector.extract_strided_slice %7 {offsets = [0, 19], sizes = [4, 648], strides = [1, 1]} : vector<4x686xf32> to vector<4x648xf32>
    %13 = vector.extract_strided_slice %7 {offsets = [0, 20], sizes = [4, 648], strides = [1, 1]} : vector<4x686xf32> to vector<4x648xf32>
    %14 = vector.extract_strided_slice %7 {offsets = [0, 36], sizes = [4, 648], strides = [1, 1]} : vector<4x686xf32> to vector<4x648xf32>
    %15 = vector.extract_strided_slice %7 {offsets = [0, 37], sizes = [4, 648], strides = [1, 1]} : vector<4x686xf32> to vector<4x648xf32>
    %16 = vector.extract_strided_slice %7 {offsets = [0, 38], sizes = [4, 648], strides = [1, 1]} : vector<4x686xf32> to vector<4x648xf32>
    %17 = tpu.concatenate %8, %9, %10, %11, %12, %13, %14, %15, %16 in 0 : vector<4x648xf32>, vector<4x648xf32>, vector<4x648xf32>, vector<4x648xf32>, vector<4x648xf32>, vector<4x648xf32>, vector<4x648xf32>, vector<4x648xf32>, vector<4x648xf32> -> vector<36x648xf32>
    %c0_5 = arith.constant 0 : index
    %c0_6 = arith.constant 0 : index
    %18 = vector.load %arg3[%c0_5, %c0_6] : memref<4x36xf32, #tpu.memory_space<vmem>>, vector<4x36xf32>
    %cst_7 = arith.constant dense<0.000000e+00> : vector<4x648xf32>
    %19 = tpu.matmul %18, %17, %cst_7 {dimension_numbers = #tpu.dot_dimension_numbers<[1], [0], [0], [1], [0, 0, 1, 1], [], []>, precision = #tpu.contract_precision<fp32>} : vector<4x36xf32>, vector<36x648xf32>, vector<4x648xf32> -> vector<4x648xf32>
    %c0_8 = arith.constant 0 : index
    %c0_9 = arith.constant 0 : index
    %20 = vector.load %arg4[%c0_8, %c0_9] : memref<4x1xf32, #tpu.memory_space<vmem>>, vector<4x1xf32>
    %21 = vector.broadcast %20 : vector<4x1xf32> to vector<4x648xf32>
    %22 = arith.addf %19, %21 : vector<4x648xf32>
    %cst_10 = arith.constant 0.000000e+00 : f32
    %23 = vector.broadcast %cst_10 : f32 to vector<4x648xf32>
    %24 = arith.cmpf oge, %22, %23 : vector<4x648xf32>
    %cst_11 = arith.constant 2.000000e-01 : f32
    %25 = vector.broadcast %cst_11 : f32 to vector<4x648xf32>
    %26 = arith.mulf %25, %22 : vector<4x648xf32>
    %27 = arith.select %24, %22, %26 : vector<4x648xi1>, vector<4x648xf32>
    %28 = vector.broadcast %2 : vector<1x648xf32> to vector<4x648xf32>
    %29 = arith.mulf %27, %28 : vector<4x648xf32>
    %cst_12 = arith.constant 0.000000e+00 : f32
    %30 = vector.broadcast %cst_12 : f32 to vector<4x19xf32>
    %31 = tpu.concatenate %30, %29, %30 in 1 : vector<4x19xf32>, vector<4x648xf32>, vector<4x19xf32> -> vector<4x686xf32>
    %32 = vector.extract_strided_slice %31 {offsets = [0, 0], sizes = [4, 648], strides = [1, 1]} : vector<4x686xf32> to vector<4x648xf32>
    %33 = vector.extract_strided_slice %31 {offsets = [0, 1], sizes = [4, 648], strides = [1, 1]} : vector<4x686xf32> to vector<4x648xf32>
    %34 = vector.extract_strided_slice %31 {offsets = [0, 2], sizes = [4, 648], strides = [1, 1]} : vector<4x686xf32> to vector<4x648xf32>
    %35 = vector.extract_strided_slice %31 {offsets = [0, 18], sizes = [4, 648], strides = [1, 1]} : vector<4x686xf32> to vector<4x648xf32>
    %36 = vector.extract_strided_slice %31 {offsets = [0, 19], sizes = [4, 648], strides = [1, 1]} : vector<4x686xf32> to vector<4x648xf32>
    %37 = vector.extract_strided_slice %31 {offsets = [0, 20], sizes = [4, 648], strides = [1, 1]} : vector<4x686xf32> to vector<4x648xf32>
    %38 = vector.extract_strided_slice %31 {offsets = [0, 36], sizes = [4, 648], strides = [1, 1]} : vector<4x686xf32> to vector<4x648xf32>
    %39 = vector.extract_strided_slice %31 {offsets = [0, 37], sizes = [4, 648], strides = [1, 1]} : vector<4x686xf32> to vector<4x648xf32>
    %40 = vector.extract_strided_slice %31 {offsets = [0, 38], sizes = [4, 648], strides = [1, 1]} : vector<4x686xf32> to vector<4x648xf32>
    %41 = tpu.concatenate %32, %33, %34, %35, %36, %37, %38, %39, %40 in 0 : vector<4x648xf32>, vector<4x648xf32>, vector<4x648xf32>, vector<4x648xf32>, vector<4x648xf32>, vector<4x648xf32>, vector<4x648xf32>, vector<4x648xf32>, vector<4x648xf32> -> vector<36x648xf32>
    %c0_13 = arith.constant 0 : index
    %c0_14 = arith.constant 0 : index
    %42 = vector.load %arg5[%c0_13, %c0_14] : memref<4x36xf32, #tpu.memory_space<vmem>>, vector<4x36xf32>
    %cst_15 = arith.constant dense<0.000000e+00> : vector<4x648xf32>
    %43 = tpu.matmul %42, %41, %cst_15 {dimension_numbers = #tpu.dot_dimension_numbers<[1], [0], [0], [1], [0, 0, 1, 1], [], []>, precision = #tpu.contract_precision<fp32>} : vector<4x36xf32>, vector<36x648xf32>, vector<4x648xf32> -> vector<4x648xf32>
    %c0_16 = arith.constant 0 : index
    %c0_17 = arith.constant 0 : index
    %44 = vector.load %arg6[%c0_16, %c0_17] : memref<4x1xf32, #tpu.memory_space<vmem>>, vector<4x1xf32>
    %45 = vector.broadcast %44 : vector<4x1xf32> to vector<4x648xf32>
    %46 = arith.addf %43, %45 : vector<4x648xf32>
    %c0_18 = arith.constant 0 : index
    %c0_19 = arith.constant 0 : index
    %47 = vector.load %arg7[%c0_18, %c0_19] : memref<1x1xf32, #tpu.memory_space<vmem>>, vector<1x1xf32>
    %48 = vector.broadcast %47 : vector<1x1xf32> to vector<4x648xf32>
    %49 = arith.mulf %46, %48 : vector<4x648xf32>
    %50 = vector.extract_strided_slice %1 {offsets = [0, 19], sizes = [4, 648], strides = [1, 1]} : vector<4x686xf32> to vector<4x648xf32>
    %51 = arith.addf %49, %50 : vector<4x648xf32>
    %c0_20 = arith.constant 0 : index
    %c0_21 = arith.constant 0 : index
    %c0_22 = arith.constant 0 : index
    %52 = vector.load %arg8[%c0_20, %c0_21, %c0_22] : memref<1x4x648xf32, #tpu.memory_space<vmem>>, vector<1x4x648xf32>
    %53 = vector.shape_cast %52 : vector<1x4x648xf32> to vector<4x648xf32>
    %54 = vector.shape_cast %51 : vector<4x648xf32> to vector<1x4x648xf32>
    tpu.vector_store %arg8[%c0_20, %c0_21, %c0_22], %54 {strides = array<i32>} : memref<1x4x648xf32, #tpu.memory_space<vmem>>, vector<1x4x648xf32>,
    return
  }
  func.func @transform_0(%arg0: i32) -> (i32, i32, i32) {
    %c0_i32 = arith.constant 0 : i32
    %c0_i32_0 = arith.constant 0 : i32
    %c0_i32_1 = arith.constant 0 : i32
    return %arg0, %c0_i32, %c0_i32_0 : i32, i32, i32
  }
  func.func @transform_1(%arg0: i32) -> (i32, i32) {
    %c0_i32 = arith.constant 0 : i32
    %c0_i32_0 = arith.constant 0 : i32
    %c0_i32_1 = arith.constant 0 : i32
    return %c0_i32, %c0_i32_0 : i32, i32
  }
  func.func @transform_2(%arg0: i32) -> (i32, i32) {
    %c0_i32 = arith.constant 0 : i32
    %c0_i32_0 = arith.constant 0 : i32
    %c0_i32_1 = arith.constant 0 : i32
    return %c0_i32, %c0_i32_0 : i32, i32
  }
  func.func @transform_3(%arg0: i32) -> (i32, i32) {
    %c0_i32 = arith.constant 0 : i32
    %c0_i32_0 = arith.constant 0 : i32
    %c0_i32_1 = arith.constant 0 : i32
    return %c0_i32, %c0_i32_0 : i32, i32
  }
  func.func @transform_4(%arg0: i32) -> (i32, i32) {
    %c0_i32 = arith.constant 0 : i32
    %c0_i32_0 = arith.constant 0 : i32
    %c0_i32_1 = arith.constant 0 : i32
    return %c0_i32, %c0_i32_0 : i32, i32
  }
  func.func @transform_5(%arg0: i32) -> (i32, i32) {
    %c0_i32 = arith.constant 0 : i32
    %c0_i32_0 = arith.constant 0 : i32
    %c0_i32_1 = arith.constant 0 : i32
    return %c0_i32, %c0_i32_0 : i32, i32
  }
  func.func @transform_6(%arg0: i32) -> (i32, i32) {
    %c0_i32 = arith.constant 0 : i32
    %c0_i32_0 = arith.constant 0 : i32
    %c0_i32_1 = arith.constant 0 : i32
    return %c0_i32, %c0_i32_0 : i32, i32
  }
  func.func @transform_7(%arg0: i32) -> (i32, i32, i32) {
    %c0_i32 = arith.constant 0 : i32
    %c0_i32_0 = arith.constant 0 : i32
    %c0_i32_1 = arith.constant 0 : i32
    return %arg0, %c0_i32, %c0_i32_0 : i32, i32, i32
  }
}

</mosaic_0001>

<bundles_post_ra>
// kernel: tpu_custom_call.1
= control target key start
LH: loop header
LB: loop body
LE: loop exit
PB: predicated region body
PF: predicated region fallthrough
CT: control target
= control target key end

     0   :  { %s6082_s0 = inlined_call_operand.hbm [shape: f32[1,4,686], index: 0, kind: input, shape index: {}]   ;;  %s6083_s1 = inlined_call_operand.vmem [shape: f32[1,648], index: 1, kind: input, shape index: {}]   ;;  %s6084_s2 = inlined_call_operand.vmem [shape: f32[4,36], index: 2, kind: input, shape index: {}]   ;;  %s6085_s3 = inlined_call_operand.vmem [shape: f32[4,1], index: 3, kind: input, shape index: {}]   ;;  %s6086_s4 = inlined_call_operand.vmem [shape: f32[4,36], index: 4, kind: input, shape index: {}]   ;;  %s6087_s5 = inlined_call_operand.vmem [shape: f32[4,1], index: 5, kind: input, shape index: {}]   ;;  %s6088_s6 = inlined_call_operand.<no memory space> [shape: f32[1,1], index: 6, kind: input, shape index: {}]   ;;  %s6089_s7 = inlined_call_operand.hbm [shape: f32[1,4,648], index: 7, kind: output, shape index: {}]  }
   0x1   :  { %v12_v0 = vstv %s6088_s6 }
   0x2   :  { %13 = vst [vmem:[#allocation2] sm:$0x1] %v12_v0 }
   0x3   :  { %14 = vsyncpa [#allocation4], 0 }
   0x4   :  { %15 = vsyncpa [#allocation5], 0  ;;  %s4547_s26 = smov [#allocation3]   ;;  %s4499_s30 = scalar_lea.hbm %s6082_s0, 384 }
   0x5   :  { %s22_s27 = sshll.u32 %s4547_s26, 4  ;;  %p4500_p0 = scmp.ne.s32.totalorder %s6082_s0, %s4499_s30  ;;  %s23_s27 = int_to_ptr.vmem [resolvable:$true] %s22_s27 }
   0x6   :  { %p4503_p1 = scmp.lt.u32.totalorder %s4499_s30, %s6082_s0 }
   0x8   :  { %p4505_p2 = pnand %p4503_p1, %p4500_p0 }
   0xa   :  { %4508 = shalt.err (!%p4505_p2)
}
   0xb   :  { %s4509_s6 = scalar_lea.vmem %s23_s27, 384  ;;  %p4514_p4 = scmp.lt.s32.totalorder %s23_s27, %s23_s27 }
   0xc   :  { %p4510_p3 = scmp.ne.s32.totalorder %s23_s27, %s4509_s6  ;;  %p4515_p5 = scmp.lt.s32.totalorder %s4509_s6, %s4509_s6 }
   0xe   :  { %p4516_p6 = por %p4515_p5, %p4514_p4 }
  0x10   :  { %p4517_p7 = pnand %p4516_p6, %p4510_p3 }
  0x12   :  { %4520 = shalt.err (!%p4517_p7)
}
  0x13   :  { %25 = dma.hbm_to_vmem [thread:$0]  %s6082_s0, 384, %s23_s27, [#allocation4]  }
  0x14   :  { %4543 = dma.done.wait [#allocation4], 384  }
  0x15   :  { %4544 = vsyncadd [#allocation4], 4294966912  ;;  %v42_v1 = vld [vmem:[#allocation3 + $0x8] sm:$0xff]  ;;  %v41_v2 = vld [vmem:[#allocation3] sm:$0xff]  ;;  %s4548_s14 = smov 126   ;;  %s4549_s15 = smov 127  }
  0x16   :  { %vm46_vm0 = vcmp.ge.f32.partialorder %v42_v1, 0.0  ;;  %v49_v3 = vmul.f32 0.2, %v42_v1  ;;  %vm45_vm1 = vcmp.ge.f32.partialorder %v41_v2, 0.0  ;;  %v48_v4 = vmul.f32 0.2, %v41_v2 }
  0x17   :  { %v43_v7 = vld [vmem:[#allocation3 + $0x10] sm:$0xff]  ;;  %s4550_s0 = smov 110   ;;  %s4551_s16 = smov 109   ;;  %v6100_v15 = vmov 0.0   ;;  %vm78_vm3 = vcmask 1039360   ;;  %vm252_vm4 = vcmask 1043456  }
  0x18   :  { %v4615_v5 = vsel %vm46_vm0, %v42_v1, %v49_v3  ;;  %v4617_v6 = vsel %vm45_vm1, %v41_v2, %v48_v4  ;;  %v50_v10 = vmul.f32 0.2, %v43_v7  ;;  %vm47_vm2 = vcmp.ge.f32.partialorder %v43_v7, 0.0  ;;  %s4552_s17 = smov 108   ;;  %s4553_s18 = smov 92   ;;  %374 = vmatprep.mubr.f32.mxu0 %v6100_v15  ;;  %943 = vmatprep.mubr.f32.mxu1 %v6100_v15 }
  0x19   :  { %94 = vrot.lane.b32.xlu1 %v4615_v5, %s4548_s14  ;;  %68 = vrot.lane.b32.xlu0 %v4617_v6, %s4549_s15  ;;  %v64_v8 = vcombine.low %v4615_v5, %v4615_v5  ;;  %v4631_v9 = vcombine.high %v4617_v6, %v4617_v6  ;;  %v63_v11 = vcombine.low %v4617_v6, %v4617_v6  ;;  %s4554_s19 = smov 91   ;;  %s4556_s20 = smov 90   ;;  %vm102_vm5 = vcmask 1031168   ;;  %v277_v3 = vld [vmem:[%s6084_s2] sm:$0xf] }
  0x1a   :  { %v4638_v12 = vsel %vm47_vm2, %v43_v7, %v50_v10  ;;  %v4649_v14 = vcombine.high %v4615_v5, %v4615_v5  ;;  %vm126_vm6 = vcmask 900096   ;;  %vm284_vm7 = vcmask 293888  }
  0x1b   :  { %6128 = vst [vmem:[#allocation9_spill] sm:$0xff] %v4638_v12  ;;  %v65_v13 = vcombine.low %v4638_v12, %v4638_v12  ;;  %v4707_v16 = vcombine.high %v4638_v12, %v4638_v12  ;;  %vm174_vm8 = vcmask 883712   ;;  %vm150_vm9 = vcmask 891904  }
  0x1c   :  { %vm198_vm10 = vcmask 752640   ;;  %vm222_vm11 = vcmask 744448   ;;  %vm246_vm12 = vcmask 736256  }
  0x1d   :  { %72 = vrot.lane.b32.xlu1 %v4615_v5, %s4549_s15  ;;  %116 = vrot.lane.b32.xlu0 %v4617_v6, %s4550_s0  ;;  %6129 = vst [vmem:[#allocation10_spill] sm:$0xff] %v4707_v16 }
  0x21   :  { %70 = vrot.lane.b32.xlu0 %v64_v8, %s4549_s15  ;;  %92 = vrot.lane.b32.xlu1 %v4631_v9, %s4548_s14 }
  0x25   :  { %66 = vrot.lane.b32.xlu0 %v63_v11, %s4549_s15  ;;  %118 = vrot.lane.b32.xlu1 %v64_v8, %s4550_s0 }
  0x29   :  { %74 = vrot.lane.b32.xlu0 %v65_v13, %s4549_s15  ;;  %90 = vrot.lane.b32.xlu1 %v4617_v6, %s4548_s14 }
  0x2d   :  { %96 = vrot.lane.b32.xlu0 %v4649_v14, %s4548_s14  ;;  %98 = vrot.lane.b32.xlu1 %v4638_v12, %s4548_s14 }
  0x31   :  { %114 = vrot.lane.b32.xlu0 %v63_v11, %s4550_s0  ;;  %120 = vrot.lane.b32.xlu1 %v4615_v5, %s4550_s0 }
  0x35   :  { %122 = vrot.lane.b32.xlu0 %v65_v13, %s4550_s0  ;;  %140 = vrot.lane.b32.xlu1 %v4631_v9, %s4551_s16 }
  0x39   :  { %142 = vrot.lane.b32.xlu0 %v4615_v5, %s4551_s16  ;;  %164 = vrot.lane.b32.xlu1 %v4617_v6, %s4552_s17 }
  0x3d   :  { %166 = vrot.lane.b32.xlu0 %v64_v8, %s4552_s17  ;;  %188 = vrot.lane.b32.xlu1 %v4631_v9, %s4553_s18 }
  0x41   :  { %190 = vrot.lane.b32.xlu0 %v4615_v5, %s4553_s18  ;;  %212 = vrot.lane.b32.xlu1 %v4617_v6, %s4554_s19 }
  0x45   :  { %214 = vrot.lane.b32.xlu0 %v64_v8, %s4554_s19  ;;  %138 = vrot.lane.b32.xlu1 %v4617_v6, %s4551_s16 }
  0x49   :  { %144 = vrot.lane.b32.xlu0 %v4649_v14, %s4551_s16  ;;  %146 = vrot.lane.b32.xlu1 %v4638_v12, %s4551_s16 }
  0x4d   :  { %162 = vrot.lane.b32.xlu0 %v63_v11, %s4552_s17  ;;  %168 = vrot.lane.b32.xlu1 %v4615_v5, %s4552_s17 }
  0x51   :  { %170 = vrot.lane.b32.xlu0 %v65_v13, %s4552_s17  ;;  %186 = vrot.lane.b32.xlu1 %v4617_v6, %s4553_s18 }
  0x55   :  { %192 = vrot.lane.b32.xlu0 %v4649_v14, %s4553_s18  ;;  %194 = vrot.lane.b32.xlu1 %v4638_v12, %s4553_s18 }
  0x59   :  { %210 = vrot.lane.b32.xlu0 %v63_v11, %s4554_s19  ;;  %216 = vrot.lane.b32.xlu1 %v4615_v5, %s4554_s19 }
  0x5d   :  { %218 = vrot.lane.b32.xlu0 %v65_v13, %s4554_s19  ;;  %236 = vrot.lane.b32.xlu1 %v4631_v9, %s4556_s20 }
  0x61   :  { %238 = vrot.lane.b32.xlu0 %v4615_v5, %s4556_s20  ;;  %234 = vrot.lane.b32.xlu1 %v4617_v6, %s4556_s20 }
  0x65   :  { %240 = vrot.lane.b32.xlu0 %v4649_v14, %s4556_s20  ;;  %242 = vrot.lane.b32.xlu1 %v4638_v12, %s4556_s20 }
  0x69   :  { %76 = vrot.lane.b32.xlu0 %v4638_v12, %s4549_s15  ;;  %100 = vrot.lane.b32.xlu1 %v4707_v16, %s4548_s14 }
  0x6d   :  { %124 = vrot.lane.b32.xlu0 %v4638_v12, %s4550_s0  ;;  %148 = vrot.lane.b32.xlu1 %v4707_v16, %s4551_s16 }
  0x71   :  { %172 = vrot.lane.b32.xlu0 %v4638_v12, %s4552_s17  ;;  %196 = vrot.lane.b32.xlu1 %v4707_v16, %s4553_s18 }
  0x75   :  { %220 = vrot.lane.b32.xlu0 %v4638_v12, %s4554_s19  ;;  %244 = vrot.lane.b32.xlu1 %v4707_v16, %s4556_s20 }
  0x8b   :  { %v95_v17 = vpop.permute.xlu1 %94  ;;  %v69_v18 = vpop.permute.xlu0 %68 }
  0x8f   :  { %v73_v19 = vpop.permute.xlu1 %72  ;;  %v117_v20 = vpop.permute.xlu0 %116 }
  0x93   :  { %v71_v21 = vpop.permute.xlu0 %70  ;;  %v93_v22 = vpop.permute.xlu1 %92 }
  0x94   :  { %v80_v23 = vsel %vm78_vm3, %v69_v18, %v71_v21  ;;  %v104_v27 = vsel %vm102_vm5, %v93_v22, %v95_v17  ;;  %v81_v45 = vsel %vm78_vm3, %v71_v21, %v73_v19 }
  0x95   :  { %v4728_v24 = vsel %vm252_vm4, %v4631_v9, %v80_v23  ;;  %v255_v54 = vsel %vm252_vm4, %v4615_v5, %v81_v45 }
  0x96   :  { %v300_v30 = vand.u32 4294901760, %v4728_v24  ;;  %v871_v0 = vand.u32 4294901760, %v255_v54 }
  0x97   :  { %v67_v25 = vpop.permute.xlu0 %66  ;;  %v119_v26 = vpop.permute.xlu1 %118 }
  0x98   :  { %v128_v28 = vsel %vm126_vm6, %v117_v20, %v119_v26  ;;  %v79_v37 = vsel %vm78_vm3, %v67_v25, %v69_v18  ;;  %v4819_v25 = vsub.f32 %v4728_v24, %v300_v30 }
  0x99   :  { %v4733_v29 = vsel %vm252_vm4, %v104_v27, %v128_v28  ;;  %v253_v38 = vsel %vm252_vm4, %v4617_v6, %v79_v37  ;;  %v286_v6 = vsel %vm284_vm7, %v277_v3, 0  ;;  %v4830_v37 = vsub.f32 %v255_v54, %v871_v0 }
  0x9a   :  { %v304_v31 = vand.u32 4294901760, %v4733_v29  ;;  %v302_v48 = vand.u32 4294901760, %v253_v38  ;;  %v4798_v10 = vand.u32 4294901760, %v286_v6 }
  0x9b   :  { %v4737_v32 = vpop.permute.xlu0 %74  ;;  %v91_v33 = vpop.permute.xlu1 %90  ;;  %v6091_v45 = vand.u32 4294901760, %v4830_v37 }
  0x9c   :  { %6130 = vst [vmem:[#allocation11_spill] sm:$0xff] %v4737_v32  ;;  %v4743_v34 = vpack.c.bf16 %v304_v31, %v300_v30  ;;  %v82_v41 = vsel %vm78_vm3, %v73_v19, %v4737_v32  ;;  %v103_v42 = vsel %vm102_vm5, %v91_v33, %v93_v22  ;;  %v4823_v28 = vsub.f32 %v253_v38, %v302_v48 }
  0x9d   :  { %v4762_v51 = vsel %vm252_vm4, %v4649_v14, %v82_v41  ;;  %v6099_v41 = vand.u32 4294901760, %v4819_v25  ;;  %v4838_v30 = vsub.f32 %v4733_v29, %v304_v31 }
  0x9e   :  { %4119 = vmatprep.subr.bf16.mxu0 %v4743_v34  ;;  %v869_v61 = vand.u32 4294901760, %v4762_v51  ;;  %v6096_v24 = vand.u32 4294901760, %v4823_v28 }
  0x9f   :  { %v97_v35 = vpop.permute.xlu0 %96  ;;  %v4746_v36 = vpop.permute.xlu1 %98  ;;  %v4854_v54 = vsub.f32 %v4819_v25, %v6099_v41 }
  0xa0   :  { %6131 = vst [vmem:[#allocation12_spill] sm:$0xff] %v4746_v36  ;;  %v105_v46 = vsel %vm102_vm5, %v95_v17, %v97_v35  ;;  %v106_v55 = vsel %vm102_vm5, %v97_v35, %v4746_v36  ;;  %v4859_v29 = vsub.f32 %v4823_v28, %v6096_v24  ;;  %v4862_v31 = vsub.f32 %v4762_v51, %v869_v61 }
  0xa1   :  { %v4879_v51 = vsub.f32 %v4830_v37, %v6091_v45 }
  0xa3   :  { %v115_v39 = vpop.permute.xlu0 %114  ;;  %v121_v40 = vpop.permute.xlu1 %120 }
  0xa4   :  { %v127_v43 = vsel %vm126_vm6, %v115_v39, %v117_v20  ;;  %v129_v44 = vsel %vm126_vm6, %v119_v26, %v121_v40  ;;  %v4813_v20 = vsub.f32 %v286_v6, %v4798_v10 }
  0xa5   :  { %v259_v47 = vsel %vm252_vm4, %v103_v42, %v127_v43  ;;  %v261_v50 = vsel %vm252_vm4, %v105_v46, %v129_v44 }
  0xa6   :  { %v306_v49 = vand.u32 4294901760, %v259_v47  ;;  %v875_v59 = vand.u32 4294901760, %v261_v50  ;;  %v4828_v35 = vand.u32 4294901760, %v4813_v20 }
  0xa7   :  { %v4764_v52 = vpop.permute.xlu0 %122  ;;  %v4766_v53 = vpop.permute.xlu1 %140 }
  0xa8   :  { %v130_v56 = vsel %vm126_vm6, %v121_v40, %v4764_v52  ;;  %v4774_v57 = vpack.c.bf16 %v306_v49, %v302_v48  ;;  %v4783_v2 = vpack.c.bf16 %v875_v59, %v871_v0  ;;  %v378_v38 = vsub.f32 %v4813_v20, %v4828_v35 }
  0xa9   :  { %v262_v58 = vsel %vm252_vm4, %v106_v55, %v130_v56  ;;  %v4842_v42 = vsub.f32 %v259_v47, %v306_v49  ;;  %v4844_v43 = vsub.f32 %v261_v50, %v875_v59  ;;  %v6098_v47 = vand.u32 4294901760, %v4838_v30 }
  0xaa   :  { %v873_v60 = vand.u32 4294901760, %v262_v58  ;;  %4121 = vmatpush1.bf16.msra.mxu0 %v4774_v57  ;;  %v4865_v49 = vand.u32 4294901760, %v378_v38 }
  0xab   :  { %v4779_v62 = vpop.permute.xlu0 %142  ;;  %v165_v63 = vpop.permute.xlu1 %164  ;;  %v6095_v50 = vand.u32 4294901760, %v4842_v42 }
  0xac   :  { %v4781_v1 = vpack.c.bf16 %v873_v60, %v869_v61  ;;  %v152_v11 = vsel %vm150_vm9, %v4766_v53, %v4779_v62  ;;  %v4868_v55 = vsub.f32 %v262_v58, %v873_v60  ;;  %v6090_v61 = vand.u32 4294901760, %v4844_v43 }
  0xae   :  { %4167 = vmatprep.subr.bf16.mxu1 %v4781_v1  ;;  %v4913_v38 = vsub.f32 %v4844_v43, %v6090_v61  ;;  %v4557_v61 = vmov 0  }
  0xaf   :  { %v167_v4 = vpop.permute.xlu0 %166  ;;  %4169 = vmatpush1.bf16.msra.mxu1 %v4783_v2  ;;  %v4790_v5 = vpop.permute.xlu1 %188  ;;  %4491 = vset.pattern.permute.xlu0 %v4557_v61 }
  0xb0   :  { %v176_v9 = vsel %vm174_vm8, %v165_v63, %v167_v4  ;;  %4492 = vset.pattern.permute.xlu1 %v4557_v61 }
  0xb1   :  { %v266_v13 = vsel %vm252_vm4, %v152_v11, %v176_v9  ;;  %v390_v11 = vand.u32 4294901760, %v4854_v54 }
  0xb2   :  { %v308_v22 = vand.u32 4294901760, %v266_v13 }
  0xb3   :  { %v4793_v7 = vpop.permute.xlu0 %190  ;;  %v4795_v8 = vpop.permute.xlu1 %212 }
  0xb4   :  { %v200_v18 = vsel %vm198_vm10, %v4790_v5, %v4793_v7  ;;  %v4873_v0 = vsub.f32 %v266_v13, %v308_v22 }
  0xb7   :  { %v4804_v14 = vpop.permute.xlu0 %214  ;;  %v139_v17 = vpop.permute.xlu1 %138 }
  0xb8   :  { %v224_v19 = vsel %vm222_vm11, %v4795_v8, %v4804_v14  ;;  %v151_v58 = vsel %vm150_vm9, %v139_v17, %v4766_v53  ;;  %v396_v53 = vand.u32 4294901760, %v4859_v29 }
  0xb9   :  { %v272_v21 = vsel %vm252_vm4, %v200_v18, %v224_v19  ;;  %v401_v19 = vsub.f32 %v4838_v30, %v6098_v47 }
  0xba   :  { %v312_v23 = vand.u32 4294901760, %v272_v21 }
  0xbb   :  { %v145_v26 = vpop.permute.xlu0 %144  ;;  %v4821_v27 = vpop.permute.xlu1 %146 }
  0xbc   :  { %v4825_v33 = vpack.c.bf16 %v312_v23, %v308_v22  ;;  %v4846_v44 = vsub.f32 %v272_v21, %v312_v23  ;;  %v154_v60 = vsel %vm150_vm9, %v145_v26, %v4821_v27  ;;  %v153_v17 = vsel %vm150_vm9, %v4779_v62, %v145_v26 }
  0xbd   :  { %v6097_v21 = vand.u32 4294901760, %v4862_v31  ;;  %v6093_v22 = vand.u32 4294901760, %v4868_v55 }
  0xbe   :  { %4123 = vmatprep.subr.bf16.mxu0 %v4825_v33  ;;  %v6092_v3 = vand.u32 4294901760, %v4846_v44 }
  0xbf   :  { %v163_v39 = vpop.permute.xlu0 %162  ;;  %v169_v40 = vpop.permute.xlu1 %168 }
  0xc0   :  { %v175_v56 = vsel %vm174_vm8, %v163_v39, %v165_v63  ;;  %v177_v63 = vsel %vm174_vm8, %v167_v4, %v169_v40  ;;  %v407_v4 = vsub.f32 %v4842_v42, %v6095_v50  ;;  %v6094_v39 = vand.u32 4294901760, %v4873_v0 }
  0xc1   :  { %v265_v13 = vsel %vm252_vm4, %v151_v58, %v175_v56  ;;  %v267_v23 = vsel %vm252_vm4, %v153_v17, %v177_v63  ;;  %v402_v17 = vand.u32 4294901760, %v401_v19  ;;  %v977_v50 = vand.u32 4294901760, %v4913_v38 }
  0xc2   :  { %v310_v54 = vand.u32 4294901760, %v265_v13  ;;  %v408_v45 = vand.u32 4294901760, %v407_v4 }
  0xc3   :  { %v4849_v46 = vpop.permute.xlu0 %170  ;;  %v187_v48 = vpop.permute.xlu1 %186 }
  0xc4   :  { %v178_v59 = vsel %vm174_vm8, %v169_v40, %v4849_v46  ;;  %v425_v40 = vsub.f32 %v4846_v44, %v6092_v3  ;;  %v199_v26 = vsel %vm198_vm10, %v187_v48, %v4790_v5  ;;  %v4932_v3 = vsub.f32 %v4868_v55, %v6093_v22 }
  0xc5   :  { %v4892_v18 = vsel %vm252_vm4, %v154_v60, %v178_v59  ;;  %v278_v59 = vld [vmem:[%s6085_s3] sm:$0xf]  ;;  %v4937_v19 = vsub.f32 %v265_v13, %v310_v54 }
  0xc6   :  { %v877_v62 = vand.u32 4294901760, %v4892_v18  ;;  %281 = vperm.xlu0 %4491, %v278_v59  }
  0xc7   :  { %v193_v6 = vpop.permute.xlu0 %192  ;;  %v4887_v9 = vpop.permute.xlu1 %194 }
  0xc8   :  { %v201_v58 = vsel %vm198_vm10, %v4793_v7, %v193_v6  ;;  %v879_v7 = vand.u32 4294901760, %v267_v23  ;;  %v4940_v61 = vsub.f32 %v4892_v18, %v877_v62  ;;  %v202_v4 = vsel %vm198_vm10, %v193_v6, %v4887_v9 }
  0xc9   :  { %v4126_v18 = vpack.c.bf16 %v402_v17, %v390_v11  ;;  %v4958_v6 = vsub.f32 %v4862_v31, %v6097_v21  ;;  %v971_v17 = vand.u32 4294901760, %v4932_v3 }
  0xcb   :  { %v211_v29 = vpop.permute.xlu0 %210  ;;  %v217_v56 = vpop.permute.xlu1 %216 }
  0xcc   :  { %v223_v60 = vsel %vm222_vm11, %v211_v29, %v4795_v8  ;;  %v225_v63 = vsel %vm222_vm11, %v4804_v14, %v217_v56  ;;  %v413_v14 = vsub.f32 %v4873_v0, %v6094_v39 }
  0xcd   :  { %v271_v5 = vsel %vm252_vm4, %v199_v26, %v223_v60  ;;  %v273_v48 = vsel %vm252_vm4, %v201_v58, %v225_v63  ;;  %v426_v60 = vand.u32 4294901760, %v425_v40 }
  0xce   :  { %v314_v8 = vand.u32 4294901760, %v271_v5  ;;  %v883_v29 = vand.u32 4294901760, %v273_v48  ;;  %v414_v24 = vand.u32 4294901760, %v413_v14 }
  0xcf   :  { %v4944_v26 = vpop.permute.xlu0 %218  ;;  %v237_v58 = vpop.permute.xlu1 %236 }
  0xd0   :  { %v4946_v59 = vsub.f32 %v271_v5, %v314_v8  ;;  %v4948_v63 = vsub.f32 %v273_v48, %v883_v29  ;;  %v226_v22 = vsel %vm222_vm11, %v217_v56, %v4944_v26  ;;  %v4952_v39 = vpack.c.bf16 %v314_v8, %v310_v54 }
  0xd1   :  { %v274_v13 = vsel %vm252_vm4, %v202_v4, %v226_v22  ;;  %v4128_v48 = vpack.c.bf16 %v408_v45, %v396_v53  ;;  %v6105_v54 = vand.u32 4294901760, %v4937_v19  ;;  %v6104_v8 = vand.u32 4294901760, %v4940_v61 }
  0xd2   :  { %v6103_v40 = vand.u32 4294901760, %v4946_v59  ;;  %v881_v5 = vand.u32 4294901760, %v274_v13  ;;  %4125 = vmatpush1.bf16.msra.mxu0 %v4952_v39  ;;  %v6102_v56 = vand.u32 4294901760, %v4948_v63  ;;  %v4967_v4 = vsub.f32 %v267_v23, %v879_v7 }
  0xd3   :  { %v239_v22 = vpop.permute.xlu0 %238  ;;  %v235_v11 = vpop.permute.xlu1 %234  ;;  %v4130_v47 = vpack.c.bf16 %v426_v60, %v414_v24  ;;  %v4982_v15 = vpack.c.bf16 %v883_v29, %v879_v7  ;;  %v419_v24 = vsub.f32 %v4937_v19, %v6105_v54  ;;  %v982_v7 = vsub.f32 %v4940_v61, %v6104_v8 }
  0xd4   :  { %v4969_v38 = vsub.f32 %v274_v13, %v881_v5  ;;  %v248_v21 = vsel %vm246_vm12, %v237_v58, %v239_v22  ;;  %v431_v45 = vsub.f32 %v4946_v59, %v6103_v40  ;;  %v247_v14 = vsel %vm246_vm12, %v235_v11, %v237_v58 }
  0xd5   :  { %v290_v53 = vsel %vm252_vm4, %v248_v21, 0  ;;  %v4977_v41 = vpack.c.bf16 %v881_v5, %v877_v62  ;;  %v288_v23 = vsel %vm252_vm4, %v247_v14, 0  ;;  %v1000_v21 = vsub.f32 %v4948_v63, %v6102_v56 }
  0xd6   :  { %v4979_v3 = vand.u32 4294901760, %v290_v53  ;;  %v6109_v13 = vand.u32 4294901760, %v4969_v38  ;;  %v4991_v60 = vand.u32 4294901760, %v288_v23  ;;  %v6136_v12 = vand.u32 4294901760, %v4967_v4 }
  0xd7   :  { %4171 = vmatprep.subr.bf16.mxu1 %v4977_v41  ;;  %v241_v62 = vpop.permute.xlu0 %240  ;;  %v4994_v58 = vpop.permute.xlu1 %242 }
  0xd8   :  { %6132 = vst [vmem:[#allocation13_spill] sm:$0xff] %v4994_v58  ;;  %v5001_v5 = vsub.f32 %v290_v53, %v4979_v3  ;;  %v249_v11 = vsel %vm246_vm12, %v239_v22, %v241_v62  ;;  %4173 = vmatpush1.bf16.msra.mxu1 %v4982_v15  ;;  %v250_v14 = vsel %vm246_vm12, %v241_v62, %v4994_v58  ;;  %v432_v53 = vand.u32 4294901760, %v431_v45 }
  0xd9   :  { %317 = vmatprep.subr.mxu0 %v4979_v3  ;;  %v5009_v56 = vsub.f32 %v288_v23, %v4991_v60  ;;  %v292_v40 = vsel %vm252_vm4, %v249_v11, 0  ;;  %v294_v8 = vsel %vm252_vm4, %v250_v14, 0  ;;  %v994_v23 = vsub.f32 %v4969_v38, %v6109_v13 }
  0xda   :  { %319 = vmatpush1.msra.mxu0 %v4991_v60  ;;  %v5014_v54 = vand.u32 4294901760, %v292_v40  ;;  %v5016_v22 = vand.u32 4294901760, %v294_v8  ;;  %v959_v45 = vand.u32 4294901760, %v4958_v6  ;;  %v965_v58 = vand.u32 4294901760, %v4879_v51 }
  0xdb   :  { %4127 = vmatprep.subr.bf16.mxu0 %v4126_v18  ;;  %380 = vmatmul.mubr.f32.vlgmr.msra.gmra.mrb[0].mxu0 %v4865_v49  ;;  %v5024_v29 = vpop.permute.xlu0 %76  ;;  %v5026_v14 = vpop.permute.xlu1 %100  ;;  %v6135_v18 = vmov 0.0   ;;  %v988_v62 = vsub.f32 %v4967_v4, %v6136_v12  ;;  %v420_v11 = vand.u32 4294901760, %v419_v24  ;;  %v6137_v51 = vand.u32 4294901760, %v5001_v5 }
  0xdc   :  { %6133 = vst [vmem:[#allocation14_spill] sm:$0xff] %v5024_v29  ;;  %6134 = vst [vmem:[#allocation15_spill] sm:$0xff] %v5026_v14  ;;  %4129 = vmatpush1.bf16.msra.mxu0 %v4128_v48  ;;  %500 = vmatprep.mubr.f32.mxu0 %v6135_v18  ;;  %v5035_v36 = vsub.f32 %v292_v40, %v5014_v54  ;;  %v5038_v13 = vsub.f32 %v294_v8, %v5016_v22  ;;  %v983_v12 = vand.u32 4294901760, %v982_v7 }
  0xdd   :  { %4131 = vmatprep.subr.bf16.mxu0 %v4130_v47  ;;  %886 = vmatprep.subr.mxu1 %v5016_v22  ;;  %v4174_v48 = vpack.c.bf16 %v971_v17, %v959_v45  ;;  %v4176_v6 = vpack.c.bf16 %v977_v50, %v965_v58  ;;  %v437_v14 = vsub.f32 %v5001_v5, %v6137_v51  ;;  %v995_v16 = vand.u32 4294901760, %v994_v23 }
  0xde   :  { %888 = vmatpush1.msra.mxu1 %v5014_v54  ;;  %v4132_v32 = vpack.c.bf16 %v432_v53, %v420_v11  ;;  %v1001_v40 = vand.u32 4294901760, %v1000_v21  ;;  %v1011_v29 = vand.u32 4294901760, %v5035_v36  ;;  %v6138_v50 = vand.u32 4294901760, %v5009_v56 }
  0xdf   :  { %4175 = vmatprep.subr.bf16.mxu1 %v4174_v48  ;;  %v5046_v8 = vpop.permute.xlu0 %124  ;;  %949 = vmatmul.mubr.f32.vlgmr.msra.gmra.mrb[0].mxu1 %v4865_v49  ;;  %v438_v47 = vand.u32 4294901760, %v437_v14  ;;  %v1005_v24 = vand.u32 4294901760, %v5038_v13  ;;  %v5053_v58 = vpop.permute.xlu1 %148  ;;  %v989_v7 = vand.u32 4294901760, %v988_v62  ;;  %v4178_v21 = vpack.c.bf16 %v995_v16, %v983_v12 }
  0xe0   :  { %v443_v17 = vsub.f32 %v5009_v56, %v6138_v50  ;;  %4177 = vmatpush1.bf16.msra.mxu1 %v4176_v6  ;;  %4133 = vmatpush1.bf16.msra.mxu0 %v4132_v32  ;;  %v1012_v45 = vsub.f32 %v5035_v36, %v1011_v29  ;;  %v155_v16 = vsel %vm150_vm9, %v4821_v27, %v5053_v58 }
  0xe1   :  { %1069 = vmatprep.mubr.f32.mxu1 %v6135_v18  ;;  %439 = vmatprep.subr.mxu0 %v438_v47  ;;  %v4180_v53 = vpack.c.bf16 %v1001_v40, %v989_v7  ;;  %v1006_v23 = vsub.f32 %v5038_v13, %v1005_v24  ;;  %v4134_v62 = vpack.c.bf16 %v4838_v30, %v4819_v25 }
  0xe2   :  { %4179 = vmatprep.subr.bf16.mxu1 %v4178_v21  ;;  %v444_v14 = vand.u32 4294901760, %v443_v17  ;;  %v4136_v6 = vpack.c.bf16 %v4842_v42, %v4823_v28  ;;  %v4138_v27 = vpack.c.bf16 %v4846_v44, %v4873_v0  ;;  %v1013_v47 = vand.u32 4294901760, %v1012_v45 }
  0xe3   :  { %v5059_v11 = vpop.permute.xlu0 %172  ;;  %v5075_v12 = vpop.permute.xlu1 %196  ;;  %v1007_v40 = vand.u32 4294901760, %v1006_v23  ;;  %v4182_v17 = vpack.c.bf16 %v4868_v55, %v4862_v31  ;;  %v4184_v23 = vpack.c.bf16 %v4844_v43, %v4830_v37  ;;  %v4186_v45 = vpack.c.bf16 %v4969_v38, %v4940_v61 }
  0xe4   :  { %v179_v32 = vsel %vm174_vm8, %v4849_v46, %v5059_v11  ;;  %4181 = vmatpush1.bf16.msra.mxu1 %v4180_v53  ;;  %445 = vmatpush1.msra.mxu0 %v444_v14  ;;  %v203_v7 = vsel %vm198_vm10, %v4887_v9, %v5075_v12  ;;  %v4140_v53 = vpack.c.bf16 %v4946_v59, %v4937_v19 }
  0xe5   :  { %v269_v48 = vsel %vm252_vm4, %v155_v16, %v179_v32  ;;  %4135 = vmatprep.subr.bf16.mxu0 %v4134_v62  ;;  %502 = vmatmul.mubr.f32.vlgmr.msra.gmra.mrb[0].mxu0 %v4798_v10  ;;  %v4188_v62 = vpack.c.bf16 %v4948_v63, %v4967_v4 }
  0xe6   :  { %v1448_v51 = vand.u32 4294901760, %v269_v48  ;;  %4137 = vmatpush1.bf16.msra.mxu0 %v4136_v6  ;;  %592 = vmatprep.mubr.f32.mxu0 %v6135_v18 }
  0xe7   :  { %v5080_v46 = vpop.permute.xlu0 %220  ;;  %1008 = vmatprep.subr.mxu1 %v1007_v40  ;;  %4139 = vmatprep.subr.bf16.mxu0 %v4138_v27 }
  0xe8   :  { %v5083_v50 = vsub.f32 %v269_v48, %v1448_v51  ;;  %v227_v21 = vsel %vm222_vm11, %v4944_v26, %v5080_v46  ;;  %1014 = vmatpush1.msra.mxu1 %v1013_v47 }
  0xe9   :  { %v275_v14 = vsel %vm252_vm4, %v203_v7, %v227_v21  ;;  %4183 = vmatprep.subr.bf16.mxu1 %v4182_v17  ;;  %1071 = vmatmul.mubr.f32.vlgmr.msra.gmra.mrb[0].mxu1 %v4798_v10  ;;  %v6139_v21 = vand.u32 4294901760, %v4819_v25 }
  0xea   :  { %v1556_v9 = vand.u32 4294901760, %v5083_v50  ;;  %v1452_v16 = vand.u32 4294901760, %v275_v14  ;;  %4141 = vmatpush1.bf16.msra.mxu0 %v4140_v53  ;;  %4185 = vmatpush1.bf16.msra.mxu1 %v4184_v23  ;;  %v6140_v53 = vand.u32 4294901760, %v4838_v30  ;;  %v6145_v30 = vand.u32 4294901760, %v4862_v31 }
  0xeb   :  { %534 = vmatprep.subr.mxu0 %v5001_v5  ;;  %4187 = vmatprep.subr.bf16.mxu1 %v4186_v45  ;;  %v6142_v45 = vand.u32 4294901760, %v4842_v42  ;;  %v6148_v42 = vand.u32 4294901760, %v4844_v43  ;;  %v6149_v31 = vand.u32 4294901760, %v4937_v19  ;;  %v6154_v43 = vld [vmem:[#allocation10_spill] sm:$0xff] }
  0xec   :  { %v5103_v26 = vpack.c.bf16 %v1452_v16, %v1448_v51  ;;  %v5105_v32 = vsub.f32 %v275_v14, %v1452_v16  ;;  %1161 = vmatprep.mubr.f32.mxu1 %v6135_v18  ;;  %v1557_v48 = vsub.f32 %v5083_v50, %v1556_v9  ;;  %v4150_v23 = vpack.c.bf16 %v6140_v53, %v6139_v21  ;;  %v6153_v21 = vld [vmem:[#allocation14_spill] sm:$0xff] }
  0xed   :  { %v6141_v14 = vand.u32 4294901760, %v4823_v28  ;;  %v6143_v16 = vand.u32 4294901760, %v4873_v0  ;;  %v6147_v28 = vand.u32 4294901760, %v4830_v37  ;;  %v258_v53 = vsel %vm252_vm4, %v6154_v43, %v6153_v21 }
  0xee   :  { %v1568_v6 = vand.u32 4294901760, %v5105_v32  ;;  %537 = vmatpush1.msra.mxu0 %v5009_v56  ;;  %4189 = vmatpush1.bf16.msra.mxu1 %v4188_v62  ;;  %v4236_v40 = vpack.c.bf16 %v5105_v32, %v5083_v50  ;;  %v1558_v27 = vand.u32 4294901760, %v1557_v48  ;;  %v6144_v62 = vand.u32 4294901760, %v4846_v44 }
  0xef   :  { %4143 = vmatprep.subr.bf16.mxu0 %v4743_v34  ;;  %1103 = vmatprep.subr.mxu1 %v5038_v13  ;;  %v6146_v48 = vand.u32 4294901760, %v4868_v55  ;;  %v131_v44 = vsel %vm126_vm6, %v4764_v52, %v5046_v8  ;;  %v6150_v55 = vand.u32 4294901760, %v4946_v59  ;;  %v6155_v52 = vld [vmem:[#allocation11_spill] sm:$0xff] }
  0xf0   :  { %v1569_v51 = vsub.f32 %v5105_v32, %v1568_v6  ;;  %595 = vmatmul.mubr.f32.vlgmr.msra.gmra.mrb[0].mxu0 %v4813_v20  ;;  %v5123_v17 = vpack.c.bf16 %v1568_v6, %v1556_v9  ;;  %v4152_v9 = vpack.c.bf16 %v6142_v45, %v6141_v14  ;;  %v4154_v25 = vpack.c.bf16 %v6144_v62, %v6143_v16  ;;  %v6156_v59 = vld [vmem:[#allocation15_spill] sm:$0xff] }
  0xf1   :  { %4145 = vmatpush1.bf16.msra.mxu0 %v4774_v57  ;;  %675 = vmatprep.mubr.f32.mxu0 %v6135_v18  ;;  %v4198_v6 = vpack.c.bf16 %v6146_v48, %v6145_v30  ;;  %v4156_v0 = vpack.c.bf16 %v6150_v55, %v6149_v31  ;;  %v83_v19 = vsel %vm78_vm3, %v6155_v52, %v6153_v21  ;;  %v6158_v45 = vand.u32 4294901760, %v5001_v5  ;;  %v6161_v48 = vld [vmem:[#allocation9_spill] sm:$0xff] }
  0xf2   :  { %4147 = vmatprep.subr.bf16.mxu0 %v4825_v33  ;;  %1106 = vmatpush1.msra.mxu1 %v5035_v36  ;;  %v1570_v47 = vand.u32 4294901760, %v1569_v51  ;;  %v4200_v51 = vpack.c.bf16 %v6148_v42, %v6147_v28  ;;  %v6160_v16 = vand.u32 4294901760, %v4948_v63  ;;  %v270_v30 = vsel %vm252_vm4, %v5053_v58, %v5059_v11 }
  0xf3   :  { %4191 = vmatprep.subr.bf16.mxu1 %v4781_v1  ;;  %1164 = vmatmul.mubr.f32.vlgmr.msra.gmra.mrb[0].mxu1 %v4813_v20  ;;  %v6162_v63 = vand.u32 4294901760, %v5009_v56  ;;  %v1446_v58 = vand.u32 4294901760, %v270_v30 }
  0xf4   :  { %4193 = vmatpush1.bf16.msra.mxu1 %v4783_v2  ;;  %1244 = vmatprep.mubr.f32.mxu1 %v6135_v18  ;;  %v5129_v7 = vpack.c.bf16 %v1570_v47, %v1558_v27  ;;  %v6151_v27 = vand.u32 4294901760, %v4940_v61  ;;  %v6152_v47 = vand.u32 4294901760, %v4969_v38  ;;  %v264_v61 = vsel %vm252_vm4, %v6156_v59, %v5046_v8 }
  0xf5   :  { %4149 = vmatpush1.bf16.msra.mxu0 %v4952_v39  ;;  %4195 = vmatprep.subr.bf16.mxu1 %v4977_v41  ;;  %v276_v8 = vsel %vm252_vm4, %v5075_v12, %v5080_v46  ;;  %v1442_v28 = vand.u32 4294901760, %v264_v61  ;;  %v5212_v46 = vsub.f32 %v270_v30, %v1446_v58 }
  0xf6   :  { %618 = vmatprep.subr.mxu0 %v4979_v3  ;;  %v4202_v37 = vpack.c.bf16 %v6152_v47, %v6151_v27  ;;  %v1450_v11 = vand.u32 4294901760, %v276_v8 }
  0xf7   :  { %v5206_v42 = vsub.f32 %v264_v61, %v1442_v28 }
  0xf8   :  { %4197 = vmatpush1.bf16.msra.mxu1 %v4982_v15  ;;  %v5214_v56 = vsub.f32 %v276_v8, %v1450_v11 }
  0xf9   :  { %620 = vmatpush1.msra.mxu0 %v4991_v60  ;;  %1187 = vmatprep.subr.mxu1 %v5016_v22 }
  0xfa   :  { %4151 = vmatprep.subr.bf16.mxu0 %v4150_v23  ;;  %679 = vmatmul.mubr.f32.vlgmr.msra.gmra.mrb[0].mxu0 %v4828_v35  ;;  %v6157_v23 = vld [vmem:[#allocation12_spill] sm:$0xff] }
  0xfb   :  { %4153 = vmatpush1.bf16.msra.mxu0 %v4152_v9  ;;  %779 = vmatprep.mubr.f32.mxu0 %v6135_v18  ;;  %v107_v14 = vsel %vm102_vm5, %v6157_v23, %v6156_v59  ;;  %v6159_v9 = vand.u32 4294901760, %v4967_v4 }
  0xfc   :  { %4155 = vmatprep.subr.bf16.mxu0 %v4154_v25  ;;  %1189 = vmatpush1.msra.mxu1 %v5014_v54  ;;  %v263_v38 = vsel %vm252_vm4, %v107_v14, %v131_v44  ;;  %v1438_v25 = vand.u32 4294901760, %v258_v53  ;;  %v1562_v44 = vand.u32 4294901760, %v5214_v56 }
  0xfd   :  { %4199 = vmatprep.subr.bf16.mxu1 %v4198_v6  ;;  %1248 = vmatmul.mubr.f32.vlgmr.msra.gmra.mrb[0].mxu1 %v4828_v35  ;;  %v4204_v62 = vpack.c.bf16 %v6160_v16, %v6159_v9  ;;  %v257_v6 = vsel %vm252_vm4, %v6161_v48, %v83_v19  ;;  %v1444_v4 = vand.u32 4294901760, %v263_v38 }
  0xfe   :  { %4201 = vmatpush1.bf16.msra.mxu1 %v4200_v51  ;;  %1348 = vmatprep.mubr.f32.mxu1 %v6135_v18  ;;  %v5200_v5 = vsub.f32 %v258_v53, %v1438_v25  ;;  %v1440_v12 = vand.u32 4294901760, %v257_v6  ;;  %v245_v51 = vpop.permute.xlu1 %244  ;;  %v1563_v21 = vsub.f32 %v5214_v56, %v1562_v44 }
  0xff   :  { %4157 = vmatpush1.bf16.msra.mxu0 %v4156_v0  ;;  %4203 = vmatprep.subr.bf16.mxu1 %v4202_v37 }
 0x100   :  { %720 = vmatprep.subr.mxu0 %v6158_v45  ;;  %v1526_v13 = vand.u32 4294901760, %v5200_v5  ;;  %v5253_v47 = vpack.c.bf16 %v1444_v4, %v1440_v12  ;;  %v1564_v59 = vand.u32 4294901760, %v1563_v21  ;;  %v4230_v48 = vpack.c.bf16 %v5206_v42, %v5200_v5 }
 0x102   :  { %4205 = vmatpush1.bf16.msra.mxu1 %v4204_v62  ;;  %v1527_v55 = vsub.f32 %v5200_v5, %v1526_v13 }
 0x103   :  { %724 = vmatpush1.msra.mxu0 %v6162_v63  ;;  %1289 = vmatprep.subr.mxu1 %v1005_v24  ;;  %v5227_v24 = vsub.f32 %v257_v6, %v1440_v12 }
 0x104   :  { %4159 = vmatprep.subr.bf16.mxu0 %v4743_v34  ;;  %781 = vmatmul.mubr.f32.vlgmr.msra.gmra.mrb[0].mxu0 %v4798_v10  ;;  %v5220_v34 = vsub.f32 %v263_v38, %v1444_v4  ;;  %v1528_v43 = vand.u32 4294901760, %v1527_v55 }
 0x105   :  { %4161 = vmatpush1.bf16.msra.mxu0 %v4774_v57  ;;  %861 = vmatprep.mubr.f32.mxu0 %v6135_v18  ;;  %v1538_v57 = vand.u32 4294901760, %v5206_v42 }
 0x106   :  { %4163 = vmatprep.subr.bf16.mxu0 %v4825_v33  ;;  %1293 = vmatpush1.msra.mxu1 %v1011_v29  ;;  %v6163_v33 = vld [vmem:[#allocation13_spill] sm:$0xff]  ;;  %v298_v29 = vsel %vm252_vm4, %v245_v51, 0  ;;  %v1544_v31 = vand.u32 4294901760, %v5220_v34  ;;  %v4232_v6 = vpack.c.bf16 %v5220_v34, %v5227_v24 }
 0x107   :  { %4207 = vmatprep.subr.bf16.mxu1 %v4781_v1  ;;  %1350 = vmatmul.mubr.f32.vlgmr.msra.gmra.mrb[0].mxu1 %v4798_v10  ;;  %v251_v36 = vsel %vm246_vm12, %v6163_v33, %v245_v51  ;;  %v1550_v1 = vand.u32 4294901760, %v5212_v46  ;;  %v5244_v27 = vand.u32 4294901760, %v298_v29  ;;  %v4246_v50 = vpack.c.bf16 %v1538_v57, %v1526_v13 }
 0x108   :  { %4209 = vmatpush1.bf16.msra.mxu1 %v4783_v2  ;;  %1430 = vmatprep.mubr.f32.mxu1 %v6135_v18  ;;  %v5237_v2 = vpack.c.bf16 %v1442_v28, %v1438_v25  ;;  %v296_v0 = vsel %vm252_vm4, %v251_v36, 0  ;;  %v44_v28 = vld [vmem:[%s6083_s1] sm:$0x3f]  ;;  %s4558_s1 = smov 19  }
 0x109   :  { %4165 = vmatpush1.bf16.msra.mxu0 %v4952_v39  ;;  %4211 = vmatprep.subr.bf16.mxu1 %v4977_v41  ;;  %v5247_v41 = vpack.c.bf16 %v1450_v11, %v1446_v58  ;;  %v1539_v39 = vsub.f32 %v5206_v42, %v1538_v57  ;;  %v5258_v37 = vsub.f32 %v298_v29, %v5244_v27 }
 0x10a   :  { %804 = vmatprep.subr.mxu0 %v4979_v3  ;;  %v1532_v3 = vand.u32 4294901760, %v5227_v24  ;;  %v4250_v32 = vpack.c.bf16 %v1562_v44, %v1550_v1 }
 0x10b   :  { %v1540_v53 = vand.u32 4294901760, %v1539_v39  ;;  %v1574_v23 = vand.u32 4294901760, %v5258_v37 }
 0x10c   :  { %4213 = vmatpush1.bf16.msra.mxu1 %v4982_v15  ;;  %v1551_v15 = vsub.f32 %v5212_v46, %v1550_v1  ;;  %v1533_v52 = vsub.f32 %v5227_v24, %v1532_v3 }
 0x10d   :  { %806 = vmatpush1.msra.mxu0 %v4991_v60  ;;  %1373 = vmatprep.subr.mxu1 %v5016_v22  ;;  %v1545_v60 = vsub.f32 %v5220_v34, %v1544_v31  ;;  %v5271_v22 = vand.u32 4294901760, %v296_v0  ;;  %v4222_v61 = vpack.c.bf16 %v1540_v53, %v1528_v43  ;;  %v1575_v9 = vsub.f32 %v5258_v37, %v1574_v23 }
 0x10e   :  { %863 = vmatmul.mubr.f32.vlgmr.msra.gmra.mrb[0].mxu0 %v4798_v10  ;;  %4215 = vmatprep.subr.bf16.mxu0 %v5237_v2  ;;  %v1552_v19 = vand.u32 4294901760, %v1551_v15  ;;  %v1534_v38 = vand.u32 4294901760, %v1533_v52 }
 0x10f   :  { %4217 = vmatpush1.bf16.msra.mxu0 %v5253_v47  ;;  %1512 = vmatprep.mubr.f32.mxu0 %v6135_v18  ;;  %v1579_v14 = vsub.f32 %v296_v0, %v5271_v22  ;;  %v1576_v25 = vand.u32 4294901760, %v1575_v9 }
 0x110   :  { %1375 = vmatpush1.msra.mxu1 %v5014_v54  ;;  %4219 = vmatprep.subr.bf16.mxu0 %v5247_v41  ;;  %v1546_v54 = vand.u32 4294901760, %v1545_v60  ;;  %v4226_v45 = vpack.c.bf16 %v1564_v59, %v1552_v19 }
 0x111   :  { %1432 = vmatmul.mubr.f32.vlgmr.msra.gmra.mrb[0].mxu1 %v4798_v10  ;;  %v1580_v16 = vand.u32 4294901760, %v1579_v14 }
 0x112   :  { %2401 = vmatprep.mubr.f32.mxu1 %v6135_v18  ;;  %v4224_v62 = vpack.c.bf16 %v1546_v54, %v1534_v38 }
 0x113   :  { %4221 = vmatpush1.bf16.msra.mxu0 %v5103_v26  ;;  %v1581_v30 = vsub.f32 %v1579_v14, %v1580_v16 }
 0x114   :  { %1455 = vmatprep.subr.mxu0 %v5244_v27 }
 0x115   :  { %v1582_v8 = vand.u32 4294901760, %v1581_v30 }
 0x117   :  { %1457 = vmatpush1.msra.mxu0 %v5271_v22 }
 0x118   :  { %4223 = vmatprep.subr.bf16.mxu0 %v4222_v61  ;;  %1518 = vmatmul.mubr.f32.vlgmr.msra.gmra.mrb[2].mxu0 %v4865_v49  ;;  %v4234_v49 = vpack.c.bf16 %v5214_v56, %v5212_v46 }
 0x119   :  { %4225 = vmatpush1.bf16.msra.mxu0 %v4224_v62  ;;  %1638 = vmatprep.mubr.f32.mxu0 %v6135_v18 }
 0x11a   :  { %4227 = vmatprep.subr.bf16.mxu0 %v4226_v45 }
 0x11d   :  { %4229 = vmatpush1.bf16.msra.mxu0 %v5129_v7 }
 0x11e   :  { %1577 = vmatprep.subr.mxu0 %v1576_v25 }
 0x121   :  { %1583 = vmatpush1.msra.mxu0 %v1582_v8 }
 0x122   :  { %4231 = vmatprep.subr.bf16.mxu0 %v4230_v48  ;;  %1640 = vmatmul.mubr.f32.vlgmr.msra.gmra.mrb[2].mxu0 %v4798_v10 }
 0x123   :  { %4233 = vmatpush1.bf16.msra.mxu0 %v4232_v6  ;;  %1730 = vmatprep.mubr.f32.mxu0 %v6135_v18 }
 0x124   :  { %4235 = vmatprep.subr.bf16.mxu0 %v4234_v49 }
 0x127   :  { %4237 = vmatpush1.bf16.msra.mxu0 %v4236_v40 }
 0x128   :  { %1672 = vmatprep.subr.mxu0 %v5258_v37 }
 0x12b   :  { %1675 = vmatpush1.msra.mxu0 %v1579_v14 }
 0x12c   :  { %4239 = vmatprep.subr.bf16.mxu0 %v5237_v2  ;;  %1733 = vmatmul.mubr.f32.vlgmr.msra.gmra.mrb[2].mxu0 %v4813_v20  ;;  %v4248_v20 = vpack.c.bf16 %v1544_v31, %v1532_v3 }
 0x12d   :  { %4241 = vmatpush1.bf16.msra.mxu0 %v5253_v47  ;;  %1813 = vmatprep.mubr.f32.mxu0 %v6135_v18 }
 0x12e   :  { %4243 = vmatprep.subr.bf16.mxu0 %v5247_v41 }
 0x131   :  { %4245 = vmatpush1.bf16.msra.mxu0 %v5103_v26 }
 0x132   :  { %1756 = vmatprep.subr.mxu0 %v5244_v27 }
 0x135   :  { %1758 = vmatpush1.msra.mxu0 %v5271_v22 }
 0x136   :  { %4247 = vmatprep.subr.bf16.mxu0 %v4246_v50  ;;  %1817 = vmatmul.mubr.f32.vlgmr.msra.gmra.mrb[2].mxu0 %v4828_v35  ;;  %v2026_v35 = vlaneseq }
 0x137   :  { %4249 = vmatpush1.bf16.msra.mxu0 %v4248_v20  ;;  %1917 = vmatprep.mubr.f32.mxu0 %v6135_v18 }
 0x138   :  { %4251 = vmatprep.subr.bf16.mxu0 %v4250_v32  ;;  %v2027_v40 = vshrl.u32 %v2026_v35, 7 }
 0x13a   :  { %v2028_v7 = vsub.s32 0, %v2027_v40  ;;  %v2032_v42 = vsub.s32 1, %v2027_v40  ;;  %v2040_v29 = vsub.s32 3, %v2027_v40  ;;  %v2044_v39 = vsub.s32 4, %v2027_v40 }
 0x13b   :  { %4253 = vmatpush1.bf16.msra.mxu0 %v5123_v17  ;;  %v2048_v3 = vsub.s32 5, %v2027_v40 }
 0x13c   :  { %1858 = vmatprep.subr.mxu0 %v1574_v23  ;;  %v2029_v11 = vrot.slane %v44_v28, %v2028_v7  ;;  %v2033_v24 = vrot.slane %v44_v28, %v2032_v42  ;;  %v2041_v0 = vrot.slane %v44_v28, %v2040_v29  ;;  %v2045_v60 = vrot.slane %v44_v28, %v2044_v39  ;;  %v5438_v7 = vld [vmem:[#allocation3] sm:$0xff] }
 0x13d   :  { %v2049_v43 = vrot.slane %v44_v28, %v2048_v3 }
 0x13f   :  { %1862 = vmatpush1.msra.mxu0 %v1580_v16 }
 0x140   :  { %4255 = vmatprep.subr.bf16.mxu0 %v5237_v2  ;;  %1919 = vmatmul.mubr.f32.vlgmr.msra.gmra.mrb[2].mxu0 %v4798_v10 }
 0x141   :  { %4257 = vmatpush1.bf16.msra.mxu0 %v5253_v47  ;;  %1999 = vmatprep.mubr.f32.mxu0 %v6135_v18 }
 0x142   :  { %4259 = vmatprep.subr.bf16.mxu0 %v5247_v41 }
 0x145   :  { %4261 = vmatpush1.bf16.msra.mxu0 %v5103_v26  ;;  %v282_v17 = vpop.permute.xlu0 %281  ;;  %v2036_v26 = vsub.s32 2, %v2027_v40 }
 0x146   :  { %1942 = vmatprep.subr.mxu0 %v5244_v27 }
 0x147   :  { %v2037_v57 = vrot.slane %v44_v28, %v2036_v26  ;;  %v5442_v28 = vld [vmem:[#allocation3 + $0x8] sm:$0xff] }
 0x149   :  { %1944 = vmatpush1.msra.mxu0 %v5271_v22 }
 0x14a   :  { %2001 = vmatmul.mubr.f32.vlgmr.msra.gmra.mrb[2].mxu0 %v4798_v10 }
 0x14b   :  { %2970 = vmatprep.mubr.f32.mxu0 %v6135_v18 }
 0x1e1   :  { %v864_v5 = vpop.f32.mrb[0].mxu0 }
 0x1e2   :  { %v4406_v4 = vadd.f32 %v864_v5, %v282_v17  ;;  %v866_v63 = vpop.f32.mrb[1].mxu0  ;;  %v5446_v5 = vld [vmem:[#allocation3 + $0x10] sm:$0xff] }
 0x1e3   :  { %v4407_v58 = vadd.f32 %v866_v63, %v282_v17 }
 0x1e4   :  { %vm2007_vm13 = vcmp.ge.f32.partialorder %v4406_v4, 0.0  ;;  %v2013_v12 = vmul.f32 0.2, %v4406_v4  ;;  %v1433_v10 = vpop.f32.mrb[0].mxu1 }
 0x1e5   :  { %vm2008_vm14 = vcmp.ge.f32.partialorder %v4407_v58, 0.0  ;;  %v2014_v46 = vmul.f32 0.2, %v4407_v58  ;;  %v4408_v56 = vadd.f32 %v1433_v10, %v282_v17  ;;  %v1435_v51 = vpop.f32.mrb[1].mxu1 }
 0x1e6   :  { %v4409_v13 = vadd.f32 %v1435_v51, %v282_v17  ;;  %v2019_v34 = vsel %vm2007_vm13, %v4406_v4, %v2013_v12  ;;  %vm2080_vm13 = vcmask 154624  }
 0x1e7   :  { %vm2009_vm15 = vcmp.ge.f32.partialorder %v4408_v56, 0.0  ;;  %v2015_v33 = vmul.f32 0.2, %v4408_v56  ;;  %v2056_v36 = vmul.f32 %v2029_v11, %v2019_v34  ;;  %v2020_v44 = vsel %vm2008_vm14, %v4407_v58, %v2014_v46 }
 0x1e8   :  { %v2016_v1 = vmul.f32 0.2, %v4409_v13  ;;  %vm2010_vm0 = vcmp.ge.f32.partialorder %v4409_v13, 0.0  ;;  %v2057_v55 = vmul.f32 %v2033_v24, %v2020_v44  ;;  %vm2093_vm14 = vcmask 220160  }
 0x1e9   :  { %2068 = vrot.lane.b32.xlu1 %v2056_v36, %s4558_s1  ;;  %v2021_v2 = vsel %vm2009_vm15, %v4408_v56, %v2015_v33 }
 0x1ea   :  { %v2058_v31 = vmul.f32 %v2037_v57, %v2021_v2  ;;  %v2022_v27 = vsel %vm2010_vm0, %v4409_v13, %v2016_v1  ;;  %v2305_v57 = vld [vmem:[%s6086_s4] sm:$0xf]  ;;  %s4559_s4 = smov [#allocation6]  }
 0x1eb   :  { %v2059_v41 = vmul.f32 %v2041_v0, %v2022_v27  ;;  %v2313_v1 = vsel %vm284_vm7, %v2305_v57, 0  ;;  %s4108_s28 = sshll.u32 %s4559_s4, 4  ;;  %s4109_s28 = int_to_ptr.vmem [resolvable:$true] %s4108_s28 }
 0x1ec   :  { %2072 = vrot.lane.b32.xlu0 %v2058_v31, %s4558_s1  ;;  %v5477_v3 = vand.u32 4294901760, %v2313_v1  ;;  %s4521_s29 = scalar_lea.vmem %s4109_s28, 384  ;;  %p4526_p9 = scmp.lt.s32.totalorder %s4109_s28, %s4109_s28 }
 0x1ed   :  { %2070 = vrot.lane.b32.xlu1 %v2057_v55, %s4558_s1  ;;  %p4522_p8 = scmp.ne.s32.totalorder %s4109_s28, %s4521_s29  ;;  %p4527_p10 = scmp.lt.s32.totalorder %s4521_s29, %s4521_s29 }
 0x1ef   :  { %p4528_p11 = por %p4527_p10, %p4526_p9 }
 0x1f1   :  { %2074 = vrot.lane.b32.xlu1 %v2059_v41, %s4558_s1  ;;  %p4529_p12 = pnand %p4528_p11, %p4522_p8 }
 0x21d   :  { %v2002_v47 = vpop.f32.mrb[2].mxu0 }
 0x21e   :  { %v4410_v37 = vadd.f32 %v2002_v47, %v282_v17  ;;  %v2004_v15 = vpop.f32.mrb[3].mxu0 }
 0x21f   :  { %v4411_v21 = vadd.f32 %v2004_v15, %v282_v17  ;;  %v2306_v17 = vld [vmem:[%s6087_s5] sm:$0xf] }
 0x220   :  { %vm2011_vm1 = vcmp.ge.f32.partialorder %v4410_v37, 0.0  ;;  %v2017_v22 = vmul.f32 0.2, %v4410_v37 }
 0x221   :  { %vm2012_vm2 = vcmp.ge.f32.partialorder %v4411_v21, 0.0  ;;  %v2018_v53 = vmul.f32 0.2, %v4411_v21 }
 0x222   :  { %v2023_v52 = vsel %vm2011_vm1, %v4410_v37, %v2017_v22 }
 0x223   :  { %v2060_v19 = vmul.f32 %v2045_v60, %v2023_v52  ;;  %v2024_v59 = vsel %vm2012_vm2, %v4411_v21, %v2018_v53 }
 0x224   :  { %v2061_v23 = vmul.f32 %v2049_v43, %v2024_v59 }
 0x225   :  { %2076 = vrot.lane.b32.xlu0 %v2060_v19, %s4558_s1 }
 0x226   :  { %2078 = vrot.lane.b32.xlu1 %v2061_v23, %s4558_s1 }
 0x25b   :  { %v2069_v14 = vpop.permute.xlu1 %2068 }
 0x25c   :  { %v5340_v54 = vsel %vm2080_vm13, 0.0, %v2069_v14 }
 0x25d   :  { %2126 = vrot.lane.b32.xlu1 %v5340_v54, %s4548_s14  ;;  %v2097_v16 = vrot.slane %v5340_v54, 4 }
 0x25e   :  { %v2073_v45 = vpop.permute.xlu0 %2072 }
 0x25f   :  { %v2071_v61 = vpop.permute.xlu1 %2070 }
 0x260   :  { %v5345_v38 = vsel %vm2080_vm13, %v2069_v14, %v2071_v61  ;;  %v5352_v9 = vsel %vm2080_vm13, %v2071_v61, %v2073_v45 }
 0x261   :  { %2172 = vrot.lane.b32.xlu1 %v5340_v54, %s4551_s16  ;;  %2128 = vrot.lane.b32.xlu0 %v5345_v38, %s4548_s14  ;;  %v2099_v62 = vrot.slane %v5352_v9, 4  ;;  %v2098_v25 = vrot.slane %v5345_v38, 4 }
 0x263   :  { %v2075_v30 = vpop.permute.xlu1 %2074 }
 0x264   :  { %v5386_v8 = vsel %vm2080_vm13, %v2073_v45, %v2075_v30  ;;  %v5497_v45 = vsub.f32 %v2313_v1, %v5477_v3 }
 0x265   :  { %2218 = vrot.lane.b32.xlu1 %v5340_v54, %s4553_s18  ;;  %2176 = vrot.lane.b32.xlu0 %v5352_v9, %s4551_s16  ;;  %v2100_v48 = vrot.slane %v5386_v8, 4 }
 0x269   :  { %2130 = vrot.lane.b32.xlu1 %v5352_v9, %s4548_s14  ;;  %2222 = vrot.lane.b32.xlu0 %v5352_v9, %s4553_s18 }
 0x26d   :  { %2174 = vrot.lane.b32.xlu1 %v5345_v38, %s4551_s16  ;;  %2103 = vrot.lane.b32.xlu0 %v2097_v16, %s4549_s15 }
 0x271   :  { %2220 = vrot.lane.b32.xlu1 %v5345_v38, %s4553_s18  ;;  %2149 = vrot.lane.b32.xlu0 %v2097_v16, %s4550_s0 }
 0x275   :  { %2107 = vrot.lane.b32.xlu1 %v2099_v62, %s4549_s15  ;;  %2195 = vrot.lane.b32.xlu0 %v2097_v16, %s4552_s17 }
 0x279   :  { %2153 = vrot.lane.b32.xlu1 %v2099_v62, %s4550_s0  ;;  %2105 = vrot.lane.b32.xlu0 %v2098_v25, %s4549_s15 }
 0x27d   :  { %2197 = vrot.lane.b32.xlu1 %v2098_v25, %s4552_s17  ;;  %2151 = vrot.lane.b32.xlu0 %v2098_v25, %s4550_s0 }
 0x281   :  { %2243 = vrot.lane.b32.xlu1 %v2098_v25, %s4554_s19  ;;  %2199 = vrot.lane.b32.xlu0 %v2099_v62, %s4552_s17 }
 0x285   :  { %2266 = vrot.lane.b32.xlu1 %v5345_v38, %s4556_s20  ;;  %2245 = vrot.lane.b32.xlu0 %v2099_v62, %s4554_s19 }
 0x289   :  { %2264 = vrot.lane.b32.xlu1 %v5340_v54, %s4556_s20  ;;  %2241 = vrot.lane.b32.xlu0 %v2097_v16, %s4554_s19 }
 0x28d   :  { %2268 = vrot.lane.b32.xlu0 %v5352_v9, %s4556_s20  ;;  %2178 = vrot.lane.b32.xlu1 %v5386_v8, %s4551_s16 }
 0x291   :  { %2224 = vrot.lane.b32.xlu1 %v5386_v8, %s4553_s18  ;;  %2132 = vrot.lane.b32.xlu0 %v5386_v8, %s4548_s14 }
 0x295   :  { %2201 = vrot.lane.b32.xlu1 %v2100_v48, %s4552_s17  ;;  %2109 = vrot.lane.b32.xlu0 %v2100_v48, %s4549_s15 }
 0x297   :  { %v2077_v6 = vpop.permute.xlu0 %2076 }
 0x298   :  { %v5402_v49 = vsel %vm2080_vm13, %v2075_v30, %v2077_v6  ;;  %v2079_v20 = vpop.permute.xlu1 %2078 }
 0x299   :  { %2247 = vrot.lane.b32.xlu1 %v2100_v48, %s4554_s19  ;;  %2155 = vrot.lane.b32.xlu0 %v2100_v48, %s4550_s0  ;;  %v2101_v50 = vrot.slane %v5402_v49, 4  ;;  %v2085_v32 = vsel %vm2080_vm13, %v2077_v6, %v2079_v20 }
 0x29a   :  { %v5415_v35 = vsel %vm2093_vm14, %v2085_v32, 0.0 }
 0x29b   :  { %v2102_v40 = vrot.slane %v5415_v35, 4 }
 0x29d   :  { %2134 = vrot.lane.b32.xlu1 %v5402_v49, %s4548_s14  ;;  %2180 = vrot.lane.b32.xlu0 %v5402_v49, %s4551_s16 }
 0x2a1   :  { %2111 = vrot.lane.b32.xlu1 %v2101_v50, %s4549_s15  ;;  %2226 = vrot.lane.b32.xlu0 %v5402_v49, %s4553_s18 }
 0x2a5   :  { %2157 = vrot.lane.b32.xlu1 %v2101_v50, %s4550_s0  ;;  %2203 = vrot.lane.b32.xlu0 %v2101_v50, %s4552_s17 }
 0x2a9   :  { %2249 = vrot.lane.b32.xlu0 %v2101_v50, %s4554_s19  ;;  %2136 = vrot.lane.b32.xlu1 %v5415_v35, %s4548_s14 }
 0x2ad   :  { %2182 = vrot.lane.b32.xlu1 %v5415_v35, %s4551_s16  ;;  %2113 = vrot.lane.b32.xlu0 %v2102_v40, %s4549_s15 }
 0x2b1   :  { %2228 = vrot.lane.b32.xlu1 %v5415_v35, %s4553_s18  ;;  %2159 = vrot.lane.b32.xlu0 %v2102_v40, %s4550_s0 }
 0x2b5   :  { %2270 = vrot.lane.b32.xlu1 %v5386_v8, %s4556_s20  ;;  %2205 = vrot.lane.b32.xlu0 %v2102_v40, %s4552_s17 }
 0x2b9   :  { %2274 = vrot.lane.b32.xlu1 %v5415_v35, %s4556_s20  ;;  %2251 = vrot.lane.b32.xlu0 %v2102_v40, %s4554_s19  ;;  %v4117_v40 = vld [vmem:[#allocation2] ss:$0 sm:$0xff] }
 0x2bd   :  { %2272 = vrot.lane.b32.xlu0 %v5402_v49, %s4556_s20  ;;  %4041 = vperm.xlu1 %4492, %v4117_v40  }
 0x2c1   :  { %2309 = vperm.xlu0 %4491, %v2306_v17  }
 0x2c5   :  { %4056 = vrot.lane.b32.xlu0 %v5438_v7, %s4551_s16 }
 0x2c9   :  { %4060 = vrot.lane.b32.xlu0 %v5442_v28, %s4551_s16 }
 0x2cd   :  { %4064 = vrot.lane.b32.xlu0 %v5446_v5, %s4551_s16 }
 0x2cf   :  { %v2127_v4 = vpop.permute.xlu1 %2126 }
 0x2d3   :  { %v2129_v63 = vpop.permute.xlu0 %2128  ;;  %v2173_v26 = vpop.permute.xlu1 %2172 }
 0x2d4   :  { %v2138_v44 = vsel %vm102_vm5, %v2127_v4, %v2129_v63 }
 0x2d7   :  { %v5450_v42 = vpop.permute.xlu0 %2176  ;;  %v2219_v58 = vpop.permute.xlu1 %2218 }
 0x2db   :  { %v5452_v11 = vpop.permute.xlu0 %2222  ;;  %v5454_v12 = vpop.permute.xlu1 %2130 }
 0x2dc   :  { %v2139_v0 = vsel %vm102_vm5, %v2129_v63, %v5454_v12 }
 0x2df   :  { %v2104_v10 = vpop.permute.xlu0 %2103  ;;  %v2175_v46 = vpop.permute.xlu1 %2174 }
 0x2e0   :  { %v2184_v43 = vsel %vm150_vm9, %v2173_v26, %v2175_v46 }
 0x2e3   :  { %v2150_v56 = vpop.permute.xlu0 %2149  ;;  %v2221_v51 = vpop.permute.xlu1 %2220 }
 0x2e4   :  { %v2231_v17 = vsel %vm198_vm10, %v2221_v51, %v5452_v11 }
 0x2e7   :  { %v2196_v13 = vpop.permute.xlu0 %2195  ;;  %v5456_v34 = vpop.permute.xlu1 %2107 }
 0x2eb   :  { %v2106_v24 = vpop.permute.xlu0 %2105  ;;  %v5461_v33 = vpop.permute.xlu1 %2153 }
 0x2ec   :  { %v2115_v36 = vsel %vm78_vm3, %v2104_v10, %v2106_v24  ;;  %v2116_v29 = vsel %vm78_vm3, %v2106_v24, %v5456_v34  ;;  %v5519_v10 = vand.u32 4294901760, %v5497_v45 }
 0x2ed   :  { %v2281_v2 = vsel %vm252_vm4, %v5340_v54, %v2115_v36  ;;  %v2282_v27 = vsel %vm252_vm4, %v5345_v38, %v2116_v29  ;;  %v2185_v54 = vsel %vm150_vm9, %v2175_v46, %v5450_v42  ;;  %v2230_v46 = vsel %vm198_vm10, %v2219_v58, %v2221_v51 }
 0x2ee   :  { %v2329_v21 = vand.u32 4294901760, %v2281_v2  ;;  %v2327_v53 = vand.u32 4294901760, %v2282_v27 }
 0x2ef   :  { %v2152_v31 = vpop.permute.xlu0 %2151  ;;  %v2198_v55 = vpop.permute.xlu1 %2197 }
 0x2f0   :  { %v2161_v41 = vsel %vm126_vm6, %v2150_v56, %v2152_v31  ;;  %v2162_v39 = vsel %vm126_vm6, %v2152_v31, %v5461_v33  ;;  %v2207_v15 = vsel %vm174_vm8, %v2196_v13, %v2198_v55  ;;  %v5499_v16 = vsub.f32 %v2281_v2, %v2329_v21 }
 0x2f1   :  { %v2287_v47 = vsel %vm252_vm4, %v2138_v44, %v2161_v41  ;;  %v2288_v37 = vsel %vm252_vm4, %v2139_v0, %v2162_v39  ;;  %v2293_v14 = vsel %vm252_vm4, %v2184_v43, %v2207_v15  ;;  %v5504_v30 = vsub.f32 %v2282_v27, %v2327_v53 }
 0x2f2   :  { %v2331_v60 = vand.u32 4294901760, %v2288_v37  ;;  %v2333_v22 = vand.u32 4294901760, %v2287_v47  ;;  %v2337_v48 = vand.u32 4294901760, %v2293_v14  ;;  %v2421_v56 = vand.u32 4294901760, %v5499_v16 }
 0x2f3   :  { %v5483_v52 = vpop.permute.xlu0 %2199  ;;  %v2244_v19 = vpop.permute.xlu1 %2243  ;;  %v2415_v1 = vand.u32 4294901760, %v5504_v30  ;;  %v4053_v2 = vcombine.high %v5438_v7, %v5438_v7  ;;  %v4054_v39 = vcombine.high %v5442_v28, %v5442_v28 }
 0x2f4   :  { %v5485_v59 = vpack.c.bf16 %v2333_v22, %v2329_v21  ;;  %v5487_v23 = vsub.f32 %v2288_v37, %v2331_v60  ;;  %v2208_v61 = vsel %vm174_vm8, %v2198_v55, %v5483_v52  ;;  %v5494_v38 = vpack.c.bf16 %v2331_v60, %v2327_v53 }
 0x2f5   :  { %v5501_v62 = vsub.f32 %v2287_v47, %v2333_v22  ;;  %v2294_v25 = vsel %vm252_vm4, %v2185_v54, %v2208_v61  ;;  %v5524_v24 = vsub.f32 %v2293_v14, %v2337_v48  ;;  %4058 = vrot.lane.b32.xlu1 %v4053_v2, %s4551_s16  ;;  %v2422_v21 = vsub.f32 %v5499_v16, %v2421_v56 }
 0x2f6   :  { %v2335_v6 = vand.u32 4294901760, %v2294_v25  ;;  %4263 = vmatprep.subr.bf16.mxu1 %v5494_v38  ;;  %v2427_v32 = vand.u32 4294901760, %v5487_v23  ;;  %v2416_v43 = vsub.f32 %v5504_v30, %v2415_v1  ;;  %v2405_v53 = vsub.f32 %v5497_v45, %v5519_v10 }
 0x2f7   :  { %v5507_v50 = vpop.permute.xlu0 %2245  ;;  %v2267_v20 = vpop.permute.xlu1 %2266  ;;  %4265 = vmatpush1.bf16.msra.mxu1 %v5485_v59  ;;  %v2433_v13 = vand.u32 4294901760, %v5501_v62  ;;  %v6117_v60 = vand.u32 4294901760, %v5524_v24 }
 0x2f8   :  { %v2254_v4 = vsel %vm222_vm11, %v2244_v19, %v5507_v50  ;;  %v5515_v63 = vsub.f32 %v2294_v25, %v2335_v6  ;;  %v2428_v44 = vsub.f32 %v5487_v23, %v2427_v32 }
 0x2f9   :  { %v2300_v26 = vsel %vm252_vm4, %v2231_v17, %v2254_v4  ;;  %v2434_v7 = vsub.f32 %v5501_v62, %v2433_v13  ;;  %4062 = vrot.lane.b32.xlu1 %v4054_v39, %s4551_s16 }
 0x2fa   :  { %v2339_v57 = vand.u32 4294901760, %v2300_v26  ;;  %v6119_v41 = vand.u32 4294901760, %v5515_v63  ;;  %v2429_v61 = vand.u32 4294901760, %v2428_v44 }
 0x2fb   :  { %v2242_v36 = vpop.permute.xlu0 %2241  ;;  %v2265_v29 = vpop.permute.xlu1 %2264 }
 0x2fc   :  { %v5532_v31 = vsub.f32 %v2300_v26, %v2339_v57  ;;  %v2253_v58 = vsel %vm222_vm11, %v2242_v36, %v2244_v19  ;;  %v2276_v51 = vsel %vm246_vm12, %v2265_v29, %v2267_v20  ;;  %v5536_v55 = vpack.c.bf16 %v2339_v57, %v2335_v6 }
 0x2fd   :  { %v2299_v0 = vsel %vm252_vm4, %v2230_v46, %v2253_v58  ;;  %v2315_v27 = vsel %vm252_vm4, %v2276_v51, 0  ;;  %v2440_v6 = vsub.f32 %v5515_v63, %v6119_v41  ;;  %v2435_v26 = vand.u32 4294901760, %v2434_v7 }
 0x2fe   :  { %v2341_v47 = vand.u32 4294901760, %v2299_v0  ;;  %v5547_v37 = vand.u32 4294901760, %v2315_v27  ;;  %4267 = vmatprep.subr.bf16.mxu1 %v5536_v55  ;;  %v6118_v15 = vand.u32 4294901760, %v5532_v31  ;;  %v2417_v36 = vand.u32 4294901760, %v2416_v43 }
 0x2ff   :  { %v5555_v22 = vpop.permute.xlu0 %2268  ;;  %v5557_v28 = vpop.permute.xlu1 %2178  ;;  %v5591_v29 = vand.u32 4294901760, %v2405_v53  ;;  %v2423_v51 = vand.u32 4294901760, %v2422_v21  ;;  %v4296_v41 = vpack.c.bf16 %v2433_v13, %v2421_v56 }
 0x300   :  { %v5564_v19 = vpack.c.bf16 %v2341_v47, %v2337_v48  ;;  %v5566_v14 = vsub.f32 %v2299_v0, %v2341_v47  ;;  %v2277_v54 = vsel %vm246_vm12, %v2267_v20, %v5555_v22  ;;  %v2452_v40 = vsub.f32 %v5532_v31, %v6118_v15 }
 0x301   :  { %v2317_v25 = vsel %vm252_vm4, %v2277_v54, 0  ;;  %v4055_v48 = vcombine.high %v5446_v5, %v5446_v5  ;;  %v5582_v20 = vsub.f32 %v2315_v27, %v5547_v37  ;;  %v2446_v5 = vsub.f32 %v5524_v24, %v6117_v60 }
 0x302   :  { %v6116_v17 = vand.u32 4294901760, %v5566_v14  ;;  %v5584_v4 = vand.u32 4294901760, %v2317_v25  ;;  %4269 = vmatpush1.bf16.msra.mxu1 %v5564_v19  ;;  %v2453_v44 = vand.u32 4294901760, %v2452_v40  ;;  %v4270_v0 = vpack.c.bf16 %v2429_v61, %v2417_v36 }
 0x303   :  { %v5587_v46 = vpop.permute.xlu0 %2132  ;;  %v5589_v57 = vpop.permute.xlu1 %2224  ;;  %v2441_v27 = vand.u32 4294901760, %v2440_v6  ;;  %4066 = vrot.lane.b32.xlu1 %v4055_v48, %s4551_s16  ;;  %v6114_v39 = vand.u32 4294901760, %v5582_v20  ;;  %v4272_v7 = vpack.c.bf16 %v2435_v26, %v2423_v51  ;;  %v2186_v21 = vsel %vm150_vm9, %v5450_v42, %v5557_v28 }
 0x304   :  { %v2458_v2 = vsub.f32 %v5566_v14, %v6116_v17  ;;  %v5600_v58 = vsub.f32 %v2317_v25, %v5584_v4  ;;  %2344 = vmatprep.subr.mxu1 %v5584_v4  ;;  %v2447_v6 = vand.u32 4294901760, %v2446_v5  ;;  %v2232_v5 = vsel %vm198_vm10, %v5452_v11, %v5589_v57 }
 0x305   :  { %v4274_v25 = vpack.c.bf16 %v2453_v44, %v2441_v27  ;;  %v2470_v42 = vsub.f32 %v5582_v20, %v6114_v39  ;;  %v4278_v11 = vpack.c.bf16 %v5487_v23, %v5504_v30  ;;  %v6164_v30 = vand.u32 4294901760, %v5515_v63 }
 0x306   :  { %2346 = vmatpush1.msra.mxu1 %v5547_v37  ;;  %v2459_v47 = vand.u32 4294901760, %v2458_v2  ;;  %v6115_v43 = vand.u32 4294901760, %v5600_v58 }
 0x307   :  { %v2110_v53 = vpop.permute.xlu0 %2109  ;;  %4271 = vmatprep.subr.bf16.mxu1 %v4270_v0  ;;  %v5607_v54 = vpop.permute.xlu1 %2201  ;;  %2407 = vmatmul.mubr.f32.vlgmr.msra.gmra.mrb[2].mxu1 %v5591_v29 }
 0x308   :  { %v2209_v61 = vsel %vm174_vm8, %v5483_v52, %v5607_v54  ;;  %4273 = vmatpush1.bf16.msra.mxu1 %v4272_v7  ;;  %v2464_v40 = vsub.f32 %v5600_v58, %v6115_v43  ;;  %2527 = vmatprep.mubr.f32.mxu1 %v6135_v18  ;;  %v4276_v36 = vpack.c.bf16 %v2459_v47, %v2447_v6  ;;  %v2471_v47 = vand.u32 4294901760, %v2470_v42 }
 0x309   :  { %v2295_v48 = vsel %vm252_vm4, %v2186_v21, %v2209_v61  ;;  %4275 = vmatprep.subr.bf16.mxu1 %v4274_v25 }
 0x30a   :  { %v2906_v26 = vand.u32 4294901760, %v2295_v48  ;;  %v2465_v44 = vand.u32 4294901760, %v2464_v40 }
 0x30b   :  { %v2156_v2 = vpop.permute.xlu0 %2155  ;;  %v2248_v52 = vpop.permute.xlu1 %2247 }
 0x30c   :  { %v5627_v51 = vsub.f32 %v2295_v48, %v2906_v26  ;;  %v2255_v0 = vsel %vm222_vm11, %v5507_v50, %v2248_v52  ;;  %4277 = vmatpush1.bf16.msra.mxu1 %v4276_v36  ;;  %v4280_v50 = vpack.c.bf16 %v5501_v62, %v5499_v16  ;;  %v2163_v48 = vsel %vm126_vm6, %v5461_v33, %v2156_v2 }
 0x30d   :  { %v2301_v27 = vsel %vm252_vm4, %v2232_v5, %v2255_v0  ;;  %2466 = vmatprep.subr.mxu1 %v2465_v44  ;;  %v4282_v36 = vpack.c.bf16 %v5532_v31, %v5515_v63  ;;  %v2140_v33 = vsel %vm102_vm5, %v5454_v12, %v5587_v46 }
 0x30e   :  { %v2910_v7 = vand.u32 4294901760, %v2301_v27  ;;  %v3014_v25 = vand.u32 4294901760, %v5627_v51 }
 0x30f   :  { %v5633_v21 = vpop.permute.xlu0 %2180  ;;  %v5635_v61 = vpop.permute.xlu1 %2134 }
 0x310   :  { %2472 = vmatpush1.msra.mxu1 %v2471_v47  ;;  %v5639_v6 = vpack.c.bf16 %v2910_v7, %v2906_v26  ;;  %v5641_v40 = vsub.f32 %v2301_v27, %v2910_v7  ;;  %v3015_v44 = vsub.f32 %v5627_v51, %v3014_v25  ;;  %v2117_v27 = vsel %vm78_vm3, %v5456_v34, %v2110_v53 }
 0x311   :  { %4279 = vmatprep.subr.bf16.mxu1 %v4278_v11  ;;  %2529 = vmatmul.mubr.f32.vlgmr.msra.gmra.mrb[2].mxu1 %v5477_v3  ;;  %v4284_v7 = vpack.c.bf16 %v5566_v14, %v5524_v24  ;;  %v2289_v47 = vsel %vm252_vm4, %v2140_v33, %v2163_v48  ;;  %v2283_v0 = vsel %vm252_vm4, %v5352_v9, %v2117_v27 }
 0x312   :  { %v3026_v42 = vand.u32 4294901760, %v5641_v40  ;;  %4281 = vmatpush1.bf16.msra.mxu1 %v4280_v50  ;;  %2619 = vmatprep.mubr.f32.mxu1 %v6135_v18  ;;  %v2902_v17 = vand.u32 4294901760, %v2289_v47  ;;  %v2141_v48 = vsel %vm102_vm5, %v5587_v46, %v5635_v61  ;;  %v2898_v27 = vand.u32 4294901760, %v2283_v0 }
 0x313   :  { %v5652_v26 = vpop.permute.xlu0 %2226  ;;  %v5654_v5 = vpop.permute.xlu1 %2111  ;;  %4283 = vmatprep.subr.bf16.mxu1 %v4282_v36  ;;  %v3016_v36 = vand.u32 4294901760, %v3015_v44  ;;  %v2187_v46 = vsel %vm150_vm9, %v5557_v28, %v5633_v21 }
 0x314   :  { %v3027_v11 = vsub.f32 %v5641_v40, %v3026_v42  ;;  %v2118_v50 = vsel %vm78_vm3, %v2110_v53, %v5654_v5  ;;  %v5670_v39 = vpack.c.bf16 %v3026_v42, %v3014_v25 }
 0x315   :  { %v2284_v53 = vsel %vm252_vm4, %v5386_v8, %v2118_v50 }
 0x316   :  { %4285 = vmatpush1.bf16.msra.mxu1 %v4284_v7  ;;  %v3028_v43 = vand.u32 4294901760, %v3027_v11  ;;  %v2896_v8 = vand.u32 4294901760, %v2284_v53  ;;  %v5698_v11 = vsub.f32 %v2289_v47, %v2902_v17 }
 0x317   :  { %v5674_v12 = vpop.permute.xlu0 %2203  ;;  %v5676_v34 = vpop.permute.xlu1 %2157  ;;  %2561 = vmatprep.subr.mxu1 %v5600_v58 }
 0x318   :  { %v2164_v9 = vsel %vm126_vm6, %v2156_v2, %v5676_v34  ;;  %v2210_v25 = vsel %vm174_vm8, %v5607_v54, %v5674_v12  ;;  %v5690_v42 = vpack.c.bf16 %v3028_v43, %v3016_v36  ;;  %v2233_v54 = vsel %vm198_vm10, %v5589_v57, %v5652_v26 }
 0x319   :  { %v2290_v44 = vsel %vm252_vm4, %v2141_v48, %v2164_v9  ;;  %v2296_v43 = vsel %vm252_vm4, %v2187_v46, %v2210_v25  ;;  %v5711_v48 = vpack.c.bf16 %v2902_v17, %v2898_v27  ;;  %v5715_v57 = vsub.f32 %v2283_v0, %v2898_v27 }
 0x31a   :  { %v2900_v33 = vand.u32 4294901760, %v2290_v44  ;;  %2564 = vmatpush1.msra.mxu1 %v5582_v20  ;;  %v2904_v9 = vand.u32 4294901760, %v2296_v43  ;;  %v6120_v46 = vand.u32 4294901760, %v5698_v11  ;;  %v5723_v17 = vsub.f32 %v2284_v53, %v2896_v8 }
 0x31b   :  { %v5696_v7 = vpop.permute.xlu0 %2249  ;;  %v2137_v2 = vpop.permute.xlu1 %2136  ;;  %4287 = vmatprep.subr.bf16.mxu1 %v5494_v38  ;;  %2622 = vmatmul.mubr.f32.vlgmr.msra.gmra.mrb[2].mxu1 %v5497_v45  ;;  %v2990_v0 = vand.u32 4294901760, %v5715_v57 }
 0x31c   :  { %v2256_v50 = vsel %vm222_vm11, %v2248_v52, %v5696_v7  ;;  %v5709_v36 = vpack.c.bf16 %v2900_v33, %v2896_v8  ;;  %4289 = vmatpush1.bf16.msra.mxu1 %v5485_v59  ;;  %2702 = vmatprep.mubr.f32.mxu1 %v6135_v18  ;;  %v3003_v60 = vsub.f32 %v5698_v11, %v6120_v46  ;;  %v2984_v15 = vand.u32 4294901760, %v5723_v17 }
 0x31d   :  { %v2302_v28 = vsel %vm252_vm4, %v2233_v54, %v2256_v50  ;;  %4291 = vmatprep.subr.bf16.mxu1 %v5536_v55  ;;  %v5735_v53 = vsub.f32 %v2290_v44, %v2900_v33  ;;  %v4294_v8 = vpack.c.bf16 %v2427_v32, %v2415_v1  ;;  %v2991_v46 = vsub.f32 %v5715_v57, %v2990_v0 }
 0x31e   :  { %v2908_v47 = vand.u32 4294901760, %v2302_v28  ;;  %4311 = vmatprep.subr.bf16.mxu0 %v5709_v36  ;;  %v5750_v44 = vsub.f32 %v2296_v43, %v2904_v9  ;;  %v6165_v32 = vand.u32 4294901760, %v5532_v31  ;;  %v3004_v62 = vand.u32 4294901760, %v3003_v60 }
 0x31f   :  { %v2114_v52 = vpop.permute.xlu0 %2113  ;;  %v5719_v25 = vpop.permute.xlu1 %2182  ;;  %4313 = vmatpush1.bf16.msra.mxu0 %v5711_v48  ;;  %v2985_v63 = vsub.f32 %v5723_v17, %v2984_v15  ;;  %v2996_v31 = vand.u32 4294901760, %v5735_v53  ;;  %v6167_v60 = vand.u32 4294901760, %v5566_v14 }
 0x320   :  { %v5725_v54 = vpack.c.bf16 %v2908_v47, %v2904_v9  ;;  %4293 = vmatpush1.bf16.msra.mxu1 %v5564_v19  ;;  %v4298_v1 = vpack.c.bf16 %v6165_v32, %v6164_v30  ;;  %v5757_v16 = vsub.f32 %v2302_v28, %v2908_v47  ;;  %v2119_v56 = vsel %vm78_vm3, %v5654_v5, %v2114_v52 }
 0x321   :  { %2645 = vmatprep.subr.mxu1 %v5584_v4  ;;  %v5776_v28 = vsel %vm252_vm4, %v5415_v35, %v2114_v52  ;;  %v2992_v9 = vand.u32 4294901760, %v2991_v46  ;;  %v2142_v30 = vsel %vm102_vm5, %v5635_v61, %v2137_v2  ;;  %v6168_v52 = vand.u32 4294901760, %v5600_v58 }
 0x322   :  { %4315 = vmatprep.subr.bf16.mxu0 %v5725_v54  ;;  %v3020_v35 = vand.u32 4294901760, %v5757_v16  ;;  %v2986_v46 = vand.u32 4294901760, %v2985_v63  ;;  %v2997_v61 = vsub.f32 %v5735_v53, %v2996_v31  ;;  %vm4099_vm3 = vcmask 64516  }
 0x323   :  { %v2160_v27 = vpop.permute.xlu0 %2159  ;;  %v2229_v50 = vpop.permute.xlu1 %2228  ;;  %4317 = vmatpush1.bf16.msra.mxu0 %v5639_v6  ;;  %vm4100_vm5 = vmor %vm4099_vm3, %vm252_vm4 }
 0x324   :  { %2647 = vmatpush1.msra.mxu1 %v5547_v37  ;;  %v2165_v43 = vsel %vm126_vm6, %v5676_v34, %v2160_v27  ;;  %v2234_v58 = vsel %vm198_vm10, %v5652_v26, %v2229_v50  ;;  %v3021_v26 = vsub.f32 %v5757_v16, %v3020_v35 }
 0x325   :  { %4295 = vmatprep.subr.bf16.mxu1 %v4294_v8  ;;  %2706 = vmatmul.mubr.f32.vlgmr.msra.gmra.mrb[2].mxu1 %v5519_v10  ;;  %v3008_v8 = vand.u32 4294901760, %v5750_v44  ;;  %v5791_v34 = vsel %vm252_vm4, %v2142_v30, %v2165_v43 }
 0x326   :  { %4297 = vmatpush1.bf16.msra.mxu1 %v4296_v41  ;;  %2806 = vmatprep.mubr.f32.mxu1 %v6135_v18  ;;  %v6166_v41 = vand.u32 4294901760, %v5524_v24  ;;  %v5786_v24 = vsel %vm252_vm4, %v5402_v49, %v2119_v56  ;;  %v3465_v49 = vand.u32 4294901760, %v5776_v28  ;;  %v3471_v43 = vand.u32 4294901760, %v5791_v34 }
 0x327   :  { %v2206_v23 = vpop.permute.xlu0 %2205  ;;  %v2271_v33 = vpop.permute.xlu1 %2270  ;;  %4299 = vmatprep.subr.bf16.mxu1 %v4298_v1  ;;  %v3467_v56 = vand.u32 4294901760, %v5786_v24 }
 0x328   :  { %v2278_v13 = vsel %vm246_vm12, %v5555_v22, %v2271_v33  ;;  %v4300_v5 = vpack.c.bf16 %v6167_v60, %v6166_v41  ;;  %v5779_v22 = vsel %vm252_vm4, %v2137_v2, %v2160_v27  ;;  %v4320_v2 = vpack.c.bf16 %v3004_v62, %v2992_v9 }
 0x329   :  { %v2319_v14 = vsel %vm252_vm4, %v2278_v13, 0  ;;  %v3469_v27 = vand.u32 4294901760, %v5779_v22  ;;  %v3009_v62 = vsub.f32 %v5750_v44, %v3008_v8  ;;  %v5818_v41 = vsel %vm252_vm4, %v5719_v25, %v2206_v23 }
 0x32a   :  { %4301 = vmatpush1.bf16.msra.mxu1 %v4300_v5  ;;  %v5808_v13 = vand.u32 4294901760, %v2319_v14  ;;  %v6169_v60 = vand.u32 4294901760, %v5582_v20  ;;  %v2188_v20 = vsel %vm150_vm9, %v5633_v21, %v5719_v25  ;;  %v5855_v21 = vsub.f32 %v5786_v24, %v3467_v56 }
 0x32b   :  { %v2252_v47 = vpop.permute.xlu0 %2251  ;;  %2747 = vmatprep.subr.mxu1 %v6168_v52  ;;  %v5839_v9 = vsub.f32 %v5779_v22, %v3469_v27  ;;  %v2275_v52 = vpop.permute.xlu1 %2274  ;;  %v3022_v22 = vand.u32 4294901760, %v3021_v26 }
 0x32c   :  { %v2257_v32 = vsel %vm222_vm11, %v5696_v7, %v2252_v47  ;;  %v5803_v1 = vsel %vm252_vm4, %v2229_v50, %v2252_v47  ;;  %v2211_v7 = vsel %vm174_vm8, %v5674_v12, %v2206_v23  ;;  %v2998_v12 = vand.u32 4294901760, %v2997_v61 }
 0x32d   :  { %v5826_v50 = vsel %vm252_vm4, %v2234_v58, %v2257_v32  ;;  %v3477_v5 = vand.u32 4294901760, %v5803_v1  ;;  %v5833_v23 = vsub.f32 %v5776_v28, %v3465_v49  ;;  %v5849_v28 = vsub.f32 %v2319_v14, %v5808_v13 }
 0x32e   :  { %2751 = vmatpush1.msra.mxu1 %v6169_v60  ;;  %v3479_v25 = vand.u32 4294901760, %v5826_v50  ;;  %v4318_v58 = vpack.c.bf16 %v2998_v12, %v2986_v46  ;;  %v5886_v12 = vpack.c.bf16 %v3469_v27, %v3465_v49 }
 0x32f   :  { %v2273_v63 = vpop.permute.xlu0 %2272  ;;  %4303 = vmatprep.subr.bf16.mxu1 %v5494_v38  ;;  %2808 = vmatmul.mubr.f32.vlgmr.msra.gmra.mrb[2].mxu1 %v5477_v3  ;;  %v5845_v38 = vsel %vm252_vm4, %v2188_v20, %v2211_v7  ;;  %v5862_v32 = vsub.f32 %v5803_v1, %v3477_v5  ;;  %v3010_v7 = vand.u32 4294901760, %v3009_v62  ;;  %v6127_v1 = vand.u32 4294901760, %v5833_v23 }
 0x330   :  { %v2279_v47 = vsel %vm246_vm12, %v2271_v33, %v2273_v63  ;;  %4305 = vmatpush1.bf16.msra.mxu1 %v5485_v59  ;;  %2888 = vmatprep.mubr.f32.mxu1 %v6135_v18  ;;  %v3473_v33 = vand.u32 4294901760, %v5818_v41  ;;  %v5858_v59 = vsub.f32 %v5791_v34, %v3471_v43  ;;  %v3475_v24 = vand.u32 4294901760, %v5845_v38 }
 0x331   :  { %v2321_v30 = vsel %vm252_vm4, %v2279_v47, 0  ;;  %4307 = vmatprep.subr.bf16.mxu1 %v5536_v55  ;;  %v6122_v55 = vand.u32 4294901760, %v5839_v9  ;;  %v2325_v34 = vsel %vm252_vm4, %v2275_v52, 0  ;;  %v2280_v60 = vsel %vm246_vm12, %v2273_v63, %v2275_v52 }
 0x332   :  { %v5851_v61 = vand.u32 4294901760, %v2321_v30  ;;  %v5876_v26 = vsub.f32 %v5818_v41, %v3473_v33  ;;  %v3038_v46 = vand.u32 4294901760, %v5849_v28  ;;  %v6121_v47 = vand.u32 4294901760, %v5858_v59 }
 0x333   :  { %v5883_v63 = vsub.f32 %v5826_v50, %v3479_v25  ;;  %v6123_v41 = vand.u32 4294901760, %v5862_v32  ;;  %v5889_v20 = vand.u32 4294901760, %v2325_v34  ;;  %v6126_v50 = vand.u32 4294901760, %v5855_v21 }
 0x334   :  { %v5865_v14 = vsub.f32 %v2321_v30, %v5851_v61  ;;  %2913 = vmatprep.subr.mxu0 %v5851_v61  ;;  %4309 = vmatpush1.bf16.msra.mxu1 %v5564_v19  ;;  %v4322_v19 = vpack.c.bf16 %v3022_v22, %v3010_v7  ;;  %v2323_v30 = vsel %vm252_vm4, %v2280_v60, 0  ;;  %v5897_v52 = vpack.c.bf16 %v3471_v43, %v3467_v56 }
 0x335   :  { %2915 = vmatpush1.msra.mxu0 %v5808_v13  ;;  %2831 = vmatprep.subr.mxu1 %v5584_v4  ;;  %v5900_v49 = vsub.f32 %v5845_v38, %v3475_v24  ;;  %v6124_v27 = vand.u32 4294901760, %v5876_v26  ;;  %v5909_v22 = vpack.c.bf16 %v3477_v5, %v3473_v33  ;;  %v3039_v43 = vsub.f32 %v5849_v28, %v3038_v46 }
 0x336   :  { %4319 = vmatprep.subr.bf16.mxu0 %v4318_v58  ;;  %v3032_v62 = vand.u32 4294901760, %v5865_v14  ;;  %2976 = vmatmul.mubr.f32.vlgmr.msra.gmra.mrb[4].mxu0 %v5591_v29  ;;  %v6125_v38 = vand.u32 4294901760, %v5883_v63  ;;  %v5918_v58 = vand.u32 4294901760, %v2323_v30  ;;  %v5923_v5 = vsub.f32 %v2325_v34, %v5889_v20 }
 0x337   :  { %4321 = vmatpush1.bf16.msra.mxu0 %v4320_v2  ;;  %3096 = vmatprep.mubr.f32.mxu0 %v6135_v18  ;;  %v3566_v2 = vsub.f32 %v5839_v9, %v6122_v55  ;;  %v3554_v33 = vsub.f32 %v5833_v23, %v6127_v1  ;;  %v3590_v7 = vsub.f32 %v5862_v32, %v6123_v41 }
 0x338   :  { %v3033_v4 = vsub.f32 %v5865_v14, %v3032_v62  ;;  %2833 = vmatpush1.msra.mxu1 %v5547_v37  ;;  %4323 = vmatprep.subr.bf16.mxu0 %v4322_v19  ;;  %v3572_v37 = vsub.f32 %v5858_v59, %v6121_v47  ;;  %v3560_v60 = vsub.f32 %v5855_v21, %v6126_v50  ;;  %v3583_v19 = vand.u32 4294901760, %v5900_v49 }
 0x339   :  { %2890 = vmatmul.mubr.f32.vlgmr.msra.gmra.mrb[2].mxu1 %v5477_v3  ;;  %4359 = vmatprep.subr.bf16.mxu1 %v5886_v12  ;;  %v5937_v34 = vpack.c.bf16 %v3479_v25, %v3475_v24  ;;  %v3578_v47 = vsub.f32 %v5876_v26, %v6124_v27  ;;  %v3596_v55 = vsub.f32 %v5883_v63, %v6125_v38  ;;  %v3601_v27 = vand.u32 4294901760, %v5923_v5 }
 0x33a   :  { %v3034_v56 = vand.u32 4294901760, %v3033_v4  ;;  %4361 = vmatpush1.bf16.msra.mxu1 %v5897_v52  ;;  %3539 = vmatprep.mubr.f32.mxu1 %v6135_v18  ;;  %v3567_v4 = vand.u32 4294901760, %v3566_v2  ;;  %v5946_v41 = vsub.f32 %v2323_v30, %v5918_v58  ;;  %v4326_v25 = vpack.c.bf16 %v5735_v53, %v5723_v17 }
 0x33b   :  { %4325 = vmatpush1.bf16.msra.mxu0 %v5690_v42  ;;  %4363 = vmatprep.subr.bf16.mxu1 %v5909_v22  ;;  %v3040_v42 = vand.u32 4294901760, %v3039_v43  ;;  %v3573_v24 = vand.u32 4294901760, %v3572_v37  ;;  %v4328_v2 = vpack.c.bf16 %v5698_v11, %v5715_v57  ;;  %v3591_v43 = vand.u32 4294901760, %v3590_v7 }
 0x33c   :  { %3035 = vmatprep.subr.mxu0 %v3034_v56  ;;  %v3555_v56 = vand.u32 4294901760, %v3554_v33  ;;  %v3584_v30 = vsub.f32 %v5900_v49, %v3583_v19  ;;  %v4330_v37 = vpack.c.bf16 %v5757_v16, %v5750_v44  ;;  %v3579_v50 = vand.u32 4294901760, %v3578_v47 }
 0x33d   :  { %v3607_v33 = vand.u32 4294901760, %v5946_v41  ;;  %v3597_v1 = vand.u32 4294901760, %v3596_v55  ;;  %v6170_v47 = vpack.c.bf16 %v5641_v40, %v5627_v51  ;;  %v4374_v51 = vpack.c.bf16 %v5839_v9, %v5833_v23 }
 0x33e   :  { %4365 = vmatpush1.bf16.msra.mxu1 %v5937_v34  ;;  %v4366_v38 = vpack.c.bf16 %v3567_v4, %v3555_v56  ;;  %v3585_v4 = vand.u32 4294901760, %v3584_v30  ;;  %v4376_v40 = vpack.c.bf16 %v5858_v59, %v5855_v21  ;;  %v6171_v56 = vand.u32 4294901760, %v5698_v11 }
 0x33f   :  { %3041 = vmatpush1.msra.mxu0 %v3040_v42  ;;  %3482 = vmatprep.subr.mxu1 %v5889_v20  ;;  %v3561_v42 = vand.u32 4294901760, %v3560_v60  ;;  %v3602_v60 = vsub.f32 %v5923_v5, %v3601_v27  ;;  %v4346_v17 = vpack.c.bf16 %v3020_v35, %v3008_v8  ;;  %v6174_v11 = vand.u32 4294901760, %v5855_v21 }
 0x340   :  { %4327 = vmatprep.subr.bf16.mxu0 %v4326_v25  ;;  %3098 = vmatmul.mubr.f32.vlgmr.msra.gmra.mrb[4].mxu0 %v5477_v3  ;;  %v4370_v25 = vpack.c.bf16 %v3591_v43, %v3579_v50  ;;  %v4372_v55 = vpack.c.bf16 %v3597_v1, %v3585_v4  ;;  %v4378_v1 = vpack.c.bf16 %v5862_v32, %v5876_v26  ;;  %v6175_v57 = vand.u32 4294901760, %v5858_v59 }
 0x341   :  { %4329 = vmatpush1.bf16.msra.mxu0 %v4328_v2  ;;  %3188 = vmatprep.mubr.f32.mxu0 %v6135_v18  ;;  %v4368_v7 = vpack.c.bf16 %v3573_v24, %v3561_v42  ;;  %v3603_v50 = vand.u32 4294901760, %v3602_v60  ;;  %v4380_v24 = vpack.c.bf16 %v5883_v63, %v5900_v49  ;;  %v4342_v2 = vpack.c.bf16 %v2996_v31, %v2984_v15 }
 0x342   :  { %4331 = vmatprep.subr.bf16.mxu0 %v4330_v37  ;;  %3484 = vmatpush1.msra.mxu1 %v5918_v58  ;;  %v4344_v43 = vpack.c.bf16 %v6171_v56, %v2990_v0  ;;  %v6173_v15 = vand.u32 4294901760, %v5839_v9  ;;  %v6177_v0 = vand.u32 4294901760, %v5862_v32 }
 0x343   :  { %4367 = vmatprep.subr.bf16.mxu1 %v4366_v38  ;;  %3545 = vmatmul.mubr.f32.vlgmr.msra.gmra.mrb[4].mxu1 %v5591_v29  ;;  %v3608_v29 = vsub.f32 %v5946_v41, %v3607_v33 }
 0x344   :  { %4369 = vmatpush1.bf16.msra.mxu1 %v4368_v7  ;;  %3665 = vmatprep.mubr.f32.mxu1 %v6135_v18 }
 0x345   :  { %4333 = vmatpush1.bf16.msra.mxu0 %v6170_v47  ;;  %4371 = vmatprep.subr.bf16.mxu1 %v4370_v25  ;;  %v3609_v38 = vand.u32 4294901760, %v3608_v29 }
 0x346   :  { %3130 = vmatprep.subr.mxu0 %v5865_v14 }
 0x348   :  { %4373 = vmatpush1.bf16.msra.mxu1 %v4372_v55 }
 0x349   :  { %3133 = vmatpush1.msra.mxu0 %v5849_v28  ;;  %3604 = vmatprep.subr.mxu1 %v3603_v50 }
 0x34a   :  { %4335 = vmatprep.subr.bf16.mxu0 %v5709_v36  ;;  %3191 = vmatmul.mubr.f32.vlgmr.msra.gmra.mrb[4].mxu0 %v5497_v45 }
 0x34b   :  { %4337 = vmatpush1.bf16.msra.mxu0 %v5711_v48  ;;  %3271 = vmatprep.mubr.f32.mxu0 %v6135_v18 }
 0x34c   :  { %4339 = vmatprep.subr.bf16.mxu0 %v5725_v54  ;;  %3610 = vmatpush1.msra.mxu1 %v3609_v38 }
 0x34d   :  { %4375 = vmatprep.subr.bf16.mxu1 %v4374_v51  ;;  %3667 = vmatmul.mubr.f32.vlgmr.msra.gmra.mrb[4].mxu1 %v5477_v3 }
 0x34e   :  { %4377 = vmatpush1.bf16.msra.mxu1 %v4376_v40  ;;  %3757 = vmatprep.mubr.f32.mxu1 %v6135_v18 }
 0x34f   :  { %4341 = vmatpush1.bf16.msra.mxu0 %v5639_v6  ;;  %4379 = vmatprep.subr.bf16.mxu1 %v4378_v1 }
 0x350   :  { %3214 = vmatprep.subr.mxu0 %v5851_v61 }
 0x352   :  { %4381 = vmatpush1.bf16.msra.mxu1 %v4380_v24 }
 0x353   :  { %3216 = vmatpush1.msra.mxu0 %v5808_v13  ;;  %3699 = vmatprep.subr.mxu1 %v5923_v5 }
 0x354   :  { %4343 = vmatprep.subr.bf16.mxu0 %v4342_v2  ;;  %3275 = vmatmul.mubr.f32.vlgmr.msra.gmra.mrb[4].mxu0 %v5519_v10 }
 0x355   :  { %4345 = vmatpush1.bf16.msra.mxu0 %v4344_v43  ;;  %3375 = vmatprep.mubr.f32.mxu0 %v6135_v18 }
 0x356   :  { %4347 = vmatprep.subr.bf16.mxu0 %v4346_v17  ;;  %3702 = vmatpush1.msra.mxu1 %v5946_v41 }
 0x357   :  { %4383 = vmatprep.subr.bf16.mxu1 %v5886_v12  ;;  %3760 = vmatmul.mubr.f32.vlgmr.msra.gmra.mrb[4].mxu1 %v5497_v45  ;;  %v6172_v45 = vand.u32 4294901760, %v5833_v23 }
 0x358   :  { %4385 = vmatpush1.bf16.msra.mxu1 %v5897_v52  ;;  %3840 = vmatprep.mubr.f32.mxu1 %v6135_v18 }
 0x359   :  { %4349 = vmatpush1.bf16.msra.mxu0 %v5670_v39  ;;  %4387 = vmatprep.subr.bf16.mxu1 %v5909_v22  ;;  %v4390_v39 = vpack.c.bf16 %v6173_v15, %v6172_v45 }
 0x35a   :  { %3316 = vmatprep.subr.mxu0 %v3032_v62 }
 0x35c   :  { %4389 = vmatpush1.bf16.msra.mxu1 %v5937_v34 }
 0x35d   :  { %3320 = vmatpush1.msra.mxu0 %v3038_v46  ;;  %3783 = vmatprep.subr.mxu1 %v5889_v20 }
 0x35e   :  { %4351 = vmatprep.subr.bf16.mxu0 %v5709_v36  ;;  %3377 = vmatmul.mubr.f32.vlgmr.msra.gmra.mrb[4].mxu0 %v5477_v3  ;;  %v4392_v36 = vpack.c.bf16 %v6175_v57, %v6174_v11 }
 0x35f   :  { %4353 = vmatpush1.bf16.msra.mxu0 %v5711_v48  ;;  %3457 = vmatprep.mubr.f32.mxu0 %v6135_v18  ;;  %v6176_v48 = vand.u32 4294901760, %v5876_v26 }
 0x360   :  { %4355 = vmatprep.subr.bf16.mxu0 %v5725_v54  ;;  %3785 = vmatpush1.msra.mxu1 %v5918_v58  ;;  %v6178_v54 = vand.u32 4294901760, %v5883_v63 }
 0x361   :  { %4391 = vmatprep.subr.bf16.mxu1 %v4390_v39  ;;  %3844 = vmatmul.mubr.f32.vlgmr.msra.gmra.mrb[4].mxu1 %v5519_v10  ;;  %v4394_v53 = vpack.c.bf16 %v6177_v0, %v6176_v48  ;;  %v2310_v10 = vpop.permute.xlu0 %2309 }
 0x362   :  { %4393 = vmatpush1.bf16.msra.mxu1 %v4392_v36  ;;  %3944 = vmatprep.mubr.f32.mxu1 %v6135_v18  ;;  %v4396_v44 = vpack.c.bf16 %v6178_v54, %v3583_v19 }
 0x363   :  { %4357 = vmatpush1.bf16.msra.mxu0 %v5639_v6  ;;  %4395 = vmatprep.subr.bf16.mxu1 %v4394_v53  ;;  %v4042_v6 = vpop.permute.xlu1 %4041 }
 0x364   :  { %3400 = vmatprep.subr.mxu0 %v5851_v61 }
 0x365   :  { %v4057_v16 = vpop.permute.xlu0 %4056 }
 0x366   :  { %4397 = vmatpush1.bf16.msra.mxu1 %v4396_v44 }
 0x367   :  { %3402 = vmatpush1.msra.mxu0 %v5808_v13  ;;  %3885 = vmatprep.subr.mxu1 %v3601_v27  ;;  %v4059_v31 = vpop.permute.xlu1 %4058 }
 0x368   :  { %3459 = vmatmul.mubr.f32.vlgmr.msra.gmra.mrb[4].mxu0 %v5477_v3 }
 0x369   :  { %v4061_v35 = vpop.permute.xlu0 %4060 }
 0x36a   :  { %3889 = vmatpush1.msra.mxu1 %v3607_v33  ;;  %v4069_v61 = vsel %vm150_vm9, %v4059_v31, %v4061_v35 }
 0x36b   :  { %4399 = vmatprep.subr.bf16.mxu1 %v5886_v12  ;;  %3946 = vmatmul.mubr.f32.vlgmr.msra.gmra.mrb[4].mxu1 %v5477_v3 }
 0x36c   :  { %4401 = vmatpush1.bf16.msra.mxu1 %v5897_v52  ;;  %4026 = vmatprep.mubr.f32.mxu1 %v6135_v18  ;;  %v4068_v18 = vsel %vm150_vm9, %v4057_v16, %v4059_v31 }
 0x36d   :  { %4403 = vmatprep.subr.bf16.mxu1 %v5909_v22  ;;  %v4065_v46 = vpop.permute.xlu0 %4064 }
 0x370   :  { %4405 = vmatpush1.bf16.msra.mxu1 %v5937_v34 }
 0x371   :  { %3969 = vmatprep.subr.mxu1 %v5889_v20 }
 0x374   :  { %3971 = vmatpush1.msra.mxu1 %v5918_v58 }
 0x375   :  { %4028 = vmatmul.mubr.f32.vlgmr.msra.gmra.mrb[4].mxu1 %v5477_v3  ;;  %v4063_v3 = vpop.permute.xlu1 %4062 }
 0x376   :  { %v4070_v41 = vsel %vm150_vm9, %v4061_v35, %v4063_v3  ;;  %v4071_v52 = vsel %vm150_vm9, %v4063_v3, %v4065_v46 }
 0x379   :  { %v4067_v5 = vpop.permute.xlu1 %4066 }
 0x37a   :  { %v4072_v42 = vsel %vm150_vm9, %v4065_v46, %v4067_v5 }
 0x40c   :  { %v2891_v8 = vpop.f32.mrb[2].mxu1 }
 0x40d   :  { %v4412_v13 = vadd.f32 %v2891_v8, %v2310_v10  ;;  %v2893_v23 = vpop.f32.mrb[3].mxu1 }
 0x40e   :  { %v4413_v9 = vadd.f32 %v2893_v23, %v2310_v10 }
 0x40f   :  { %v4044_v28 = vmul.f32 %v4412_v13, %v4042_v6 }
 0x410   :  { %v4045_v21 = vmul.f32 %v4413_v9, %v4042_v6 }
 0x411   :  { %v4079_v59 = vadd.f32 %v4068_v18, %v4044_v28 }
 0x412   :  { %v4080_v32 = vadd.f32 %v4069_v61, %v4045_v21 }
 0x414   :  { %v4091_v14 = vcombine.low %v4079_v59, %v4080_v32 }
 0x416   :  { %4097 = vst [vmem:[#allocation6] sm:$0xff] %v4091_v14 }
 0x43b   :  { %v3460_v26 = vpop.f32.mrb[4].mxu0 }
 0x43c   :  { %v4414_v62 = vadd.f32 %v3460_v26, %v2310_v10  ;;  %v3462_v63 = vpop.f32.mrb[5].mxu0 }
 0x43d   :  { %v4415_v12 = vadd.f32 %v3462_v63, %v2310_v10 }
 0x43e   :  { %v4046_v20 = vmul.f32 %v4414_v62, %v4042_v6 }
 0x43f   :  { %v4047_v49 = vmul.f32 %v4415_v12, %v4042_v6 }
 0x440   :  { %v4081_v27 = vadd.f32 %v4070_v41, %v4046_v20 }
 0x441   :  { %v4082_v22 = vadd.f32 %v4071_v52, %v4047_v49 }
 0x443   :  { %v4092_v58 = vcombine.low %v4081_v27, %v4082_v22 }
 0x445   :  { %4098 = vst [vmem:[#allocation6 + $0x8] sm:$0xff] %v4092_v58 }
 0x448   :  { %v4029_v19 = vpop.f32.mrb[4].mxu1 }
 0x449   :  { %v4416_v34 = vadd.f32 %v4029_v19, %v2310_v10  ;;  %v4031_v30 = vpop.f32.mrb[5].mxu1 }
 0x44a   :  { %v4417_v37 = vadd.f32 %v4031_v30, %v2310_v10 }
 0x44b   :  { %v4048_v33 = vmul.f32 %v4416_v34, %v4042_v6 }
 0x44c   :  { %v4049_v7 = vmul.f32 %v4417_v37, %v4042_v6 }
 0x44d   :  { %v4083_v25 = vadd.f32 %v4072_v42, %v4048_v33 }
 0x44e   :  { %v4084_v60 = vadd.f32 %v4067_v5, %v4049_v7 }
 0x450   :  { %v4093_v4 = vcombine.low %v4083_v25, %v4084_v60 }
 0x452   :  { %4101 = vst.msk [vmem:[#allocation6 + $0x10] sm:$0xff] %vm4100_vm5, %v4093_v4 }
 0x453   :  { %4532 = shalt.err (!%p4529_p12)
}
 0x454   :  { %s4533_s9 = scalar_lea.hbm %s6089_s7, 384 }
 0x455   :  { %p4534_p13 = scmp.ne.s32.totalorder %s6089_s7, %s4533_s9  ;;  %p4537_p0 = scmp.lt.u32.totalorder %s4533_s9, %s6089_s7 }
 0x457   :  { %p4539_p1 = pnand %p4537_p0, %p4534_p13 }
 0x459   :  { %4542 = shalt.err (!%p4539_p1)
}
 0x45a   :  { %4111 = dma.vmem_to_hbm [thread:$0]  %s4109_s28, 384, %s6089_s7, [#allocation5]  }
 0x45b   :  { %4545 = dma.done.wait [#allocation5], 384  }
 0x45c   :  { %4546 = vsyncadd [#allocation5], 4294966912 }
 0x45d   :  { %4115 = vsyncpa [#allocation4], 1 }
 0x45e   :  { %4116 = vsyncpa [#allocation5], 1 }

</bundles_post_ra>
